<compile_context>
chip_gen: v7x
topology: tpu7x:2x2x1
jax: 0.10.0
libtpu: 0.0.40
codegen_flags: <defaults>
</compile_context>

<pallas_src>
import math

import jax
import jax.numpy as jnp
from jax.experimental import pallas as pl
from jax.experimental.pallas import tpu as pltpu


# ----------------------------------------------------------------------------- kernel


def _make_kernel(num_heads: int, head_dim: int, weight_alpha: float, ln_eps: float = 1e-5):
    H, hd = num_heads, head_dim
    scale = 1.0 / math.sqrt(head_dim)
    alpha = float(weight_alpha)
    bf16, f32 = jnp.bfloat16, jnp.float32

    def kernel(fv_ref, ewm_ref, query_ref, qh_ref,
               wkv_ref, bkv_ref, wo_ref, bo_ref,
               g1_ref, be1_ref, w1_ref, b1_ref, w2_ref, b2_ref,
               g2_ref, be2_ref, out_ref):
        Bt, L, D = fv_ref.shape
        C = qh_ref.shape[1]

        # ---- fused K|V projection: ONE full-width (Bt*L, D) @ (D, 2D) MXU matmul
        fv_flat = fv_ref[...].astype(bf16).reshape(Bt * L, D)
        kv = jnp.dot(fv_flat, wkv_ref[...], preferred_element_type=f32) + bkv_ref[...]
        kv = kv.astype(bf16).reshape(Bt, L, 2 * D)        # keep bf16 after the bias add

        # ---- masked + normalized external weights (shared across heads / queries)
        ew = ewm_ref[:, 0, :]                             # (Bt, L)
        mask_b = ewm_ref[:, 1, :] > 0.5                   # (Bt, L)  True = valid position
        ew_masked = jnp.where(mask_b, ew, 0.0)
        ew_norm = ew_masked / (jnp.sum(ew_masked, axis=-1, keepdims=True) + 1e-9)
        ew_mix = ((1.0 - alpha) * ew_norm)[:, None, :]    # (Bt, 1, L)
        mask_rows = mask_b[:, None, :]                    # (Bt, 1, L)

        # learned-query projection is grid-invariant -> precomputed on host (qh_ref)
        qh_all = jnp.broadcast_to(qh_ref[...][None], (Bt, H, C, hd))   # tiny bf16

        # ---- per-head attention (K = head_dim contraction is inherent per head);
        #      only canonical batched matmuls, static lane slices -- no transposes
        heads_out = []
        for h in range(H):
            kh = kv[:, :, h * hd:(h + 1) * hd]                     # (Bt, L, hd)
            vh = kv[:, :, D + h * hd:D + (h + 1) * hd]             # (Bt, L, hd)
            s = jnp.einsum('bck,blk->bcl', qh_all[:, h], kh,
                           preferred_element_type=f32) * scale     # (Bt, C, L)
            s = jnp.where(mask_rows, s, -1e9)                      # masked_fill semantics
            s = s - jnp.max(s, axis=-1, keepdims=True)
            e = jnp.exp(s)
            attn = e * pl.reciprocal(jnp.sum(e, axis=-1, keepdims=True), approx=True)
            comb = alpha * attn + ew_mix
            # exact reciprocal for the renormalization (sum is ~1.0; negligible cost)
            comb = comb * (1.0 / (jnp.sum(comb, axis=-1, keepdims=True) + 1e-9))
            heads_out.append(
                jnp.einsum('bcl,blk->bck', comb.astype(bf16), vh,
                           preferred_element_type=f32).astype(bf16))    # (Bt, C, hd)

        # ---- concat heads -> ONE full-width out-projection (Bt*C, D) @ (D, D)
        attn_cat = jnp.concatenate(heads_out, axis=-1).reshape(Bt * C, D)   # (Bt*C, D)
        attn_out = jnp.dot(attn_cat, wo_ref[...],
                           preferred_element_type=f32) + bo_ref[...]        # (Bt*C, D)

        # ---- residual + LayerNorm
        x1 = (attn_out.reshape(Bt, C, D) + query_ref[...]).reshape(Bt * C, D)
        mu = jnp.mean(x1, axis=-1, keepdims=True)
        var = jnp.mean((x1 - mu) ** 2, axis=-1, keepdims=True)
        x1 = (x1 - mu) * jax.lax.rsqrt(var + ln_eps) * g1_ref[...] + be1_ref[...]

        # ---- feed-forward (M = Bt*C): Linear(D,4D) -> ReLU -> Linear(4D,D)
        h1 = jnp.dot(x1.astype(bf16), w1_ref[...], preferred_element_type=f32) + b1_ref[...]
        h1 = jnp.maximum(h1, 0.0)
        ff = jnp.dot(h1.astype(bf16), w2_ref[...], preferred_element_type=f32) + b2_ref[...]

        # ---- residual + final LayerNorm
        x2 = x1 + ff
        mu2 = jnp.mean(x2, axis=-1, keepdims=True)
        var2 = jnp.mean((x2 - mu2) ** 2, axis=-1, keepdims=True)
        out = (x2 - mu2) * jax.lax.rsqrt(var2 + ln_eps) * g2_ref[...] + be2_ref[...]

        out_ref[...] = out.reshape(Bt, C, D).astype(out_ref.dtype)

    return kernel


# --------------------------------------------------------------------- host-side helpers


def _vmem_capacity_bytes():
    # Narrow hardware query with an explicit fallback; kernel errors are never swallowed.
    try:
        return int(pltpu.get_tpu_info().vmem_capacity_bytes)
    except Exception:
        return 128 * 1024 * 1024


def _vmem_limit_bytes(Bt, L, C, D, H, fv_itemsize):
    """Shape-derived scoped-VMEM request, capped per TPU generation."""
    Dff = 4 * D
    # streamed, double-buffered per-step tiles
    stream = 2 * Bt * (L * D * fv_itemsize + C * D * fv_itemsize + 2 * L * 4)
    # grid-invariant weights, single-buffered (x1) bf16 + f32 params
    weights = 2 * (C * D + 2 * D * D + D * D + 2 * D * Dff)
    weights += 4 * (C * D + 2 * D + 10 * D + Dff)
    # in-kernel intermediates
    inter = (6 * Bt * L * 2 * D            # kv f32 + bf16
             + 16 * Bt * C * L             # per-head score working set (f32)
             + 28 * Bt * C * D             # head outputs, attn_out, x1/x2, LN temps
             + 6 * Bt * C * Dff)           # FF hidden f32 + bf16
    est = stream + weights + inter
    # ~48 MiB cap on v7x (64 MiB physical), up to ~96-100 MiB on v5e/v6e (128 MiB)
    cap = min(int(0.75 * _vmem_capacity_bytes()), 100 * 1024 * 1024)
    return int(min(max(int(1.4 * est), 32 * 1024 * 1024), cap))


def _choose_block_batch(B, C):
    """Largest divisor of B with Bt*C <= 128, keeping >= 2 grid steps when B >= 2
    (stream pipelining + both v7x TensorCores busy on the parallel batch axis)."""
    target = max(1, 128 // max(C, 1))
    best = 1
    for bt in range(1, B + 1):
        if B % bt == 0 and bt <= target and (B == 1 or B // bt >= 2):
            best = bt
    return best


def pack_params(params, num_heads):
    """Host-side, done-once packing.

    * wk|wv are fused into one (D, 2D) bf16 weight so the kernel does a single
      full-width K|V projection matmul.
    * The grid-invariant q projection (query @ Wq + bq) is precomputed in f32 and
      shipped head-major as a tiny bf16 (H, C, hd) tensor.
    * wo / w1 / w2 stay in their natural (in, out) layout, bf16.
    """
    D = params["wq"].shape[0]
    H = num_heads
    hd = D // H
    bf16, f32 = jnp.bfloat16, jnp.float32

    q_proj = (params["query"].astype(f32) @ params["wq"].astype(f32)
              + params["bq"].astype(f32))                             # (C, D), exact f32
    qh = q_proj.reshape(-1, H, hd).transpose(1, 0, 2).astype(bf16)    # (H, C, hd)

    return dict(
        query=params["query"].astype(f32),                            # residual path
        qh=qh,
        wkv=jnp.concatenate([params["wk"], params["wv"]], axis=1).astype(bf16),  # (D, 2D)
        bkv=jnp.concatenate([params["bk"], params["bv"]], axis=1).astype(f32),   # (1, 2D)
        wo=params["wo"].astype(bf16), bo=params["bo"].astype(f32),
        g1=params["g1"].astype(f32), be1=params["be1"].astype(f32),
        w1=params["w1"].astype(bf16), b1=params["b1"].astype(f32),
        w2=params["w2"].astype(bf16), b2=params["b2"].astype(f32),
        g2=params["g2"].astype(f32), be2=params["be2"].astype(f32),
    )


def video_memory_compressor(Fv, extern_weight, mask, packed,
                            *, compress_len, num_heads, weight_alpha=0.5):
    """Pallas wrapper.  Returns (Fv_compress (B,C,D) in Fv.dtype, compress_mask (B,C) bool)."""
    B, L, D = Fv.shape
    C = compress_len
    H = num_heads
    hd = D // H
    Dff = packed["w1"].shape[1]

    # merge extern_weight and mask into one streamed (B, 2, L) tile
    ewm = jnp.stack([extern_weight.astype(jnp.float32),
                     mask.astype(jnp.float32)], axis=1)

    Bt = _choose_block_batch(B, C)
    kernel = _make_kernel(H, hd, weight_alpha)

    stream3 = lambda i: (i, 0, 0)
    inv2 = lambda i: (0, 0)
    inv3 = lambda i: (0, 0, 0)
    # grid-invariant weights: constant index_map over the batch grid -> single buffer
    w2d = lambda shape: pl.BlockSpec(shape, inv2, pipeline_mode=pl.Buffered(1))
    w3d = lambda shape: pl.BlockSpec(shape, inv3, pipeline_mode=pl.Buffered(1))

    in_specs = [
        pl.BlockSpec((Bt, L, D), stream3),        # Fv (streamed, native dtype)
        pl.BlockSpec((Bt, 2, L), stream3),        # extern weight | mask (merged)
        w2d((C, D)),                              # learned query (residual path, f32)
        w3d((H, C, hd)),                          # precomputed q-projection heads (bf16)
        w2d((D, 2 * D)), w2d((1, 2 * D)),         # fused k|v projection
        w2d((D, D)), w2d((1, D)),                 # out_proj
        w2d((1, D)), w2d((1, D)),                 # norm gamma / beta
        w2d((D, Dff)), w2d((1, Dff)),             # feed-forward linear 1
        w2d((Dff, D)), w2d((1, D)),               # feed-forward linear 2
        w2d((1, D)), w2d((1, D)),                 # final_norm gamma / beta
    ]

    out = pl.pallas_call(
        kernel,
        out_shape=jax.ShapeDtypeStruct((B, C, D), Fv.dtype),
        grid_spec=pltpu.PrefetchScalarGridSpec(
            num_scalar_prefetch=0,
            grid=(B // Bt,),
            in_specs=in_specs,
            out_specs=pl.BlockSpec((Bt, C, D), stream3)),
        compiler_params=pltpu.CompilerParams(
            dimension_semantics=("parallel",),
            vmem_limit_bytes=_vmem_limit_bytes(Bt, L, C, D, H, Fv.dtype.itemsize)),
    )(Fv, ewm, packed["query"], packed["qh"],
      packed["wkv"], packed["bkv"], packed["wo"], packed["bo"],
      packed["g1"], packed["be1"], packed["w1"], packed["b1"],
      packed["w2"], packed["b2"], packed["g2"], packed["be2"])

    compress_mask = jnp.ones((B, C), dtype=jnp.bool_)
    return out, compress_mask


# --------------------------------------------------------------- params + pure-JAX reference


def init_params(key, dimension, compress_len):
    """PyTorch-style (in_features, out_features) f32 params; pack_params() converts."""
    D, C, Dff = dimension, compress_len, 4 * dimension
    ks = jax.random.split(key, 8)

    def lin(k, fan_in, fan_out):
        w = jax.random.normal(k, (fan_in, fan_out), jnp.float32) * (1.0 / math.sqrt(fan_in))
        b = jnp.zeros((1, fan_out), jnp.float32)
        return w, b

    a = math.sqrt(6.0 / (C + D))  # xavier_uniform on the learned query
    query = jax.random.uniform(ks[0], (C, D), jnp.float32, minval=-a, maxval=a)
    wq, bq = lin(ks[1], D, D)
    wk, bk = lin(ks[2], D, D)
    wv, bv = lin(ks[3], D, D)
    wo, bo = lin(ks[4], D, D)
    w1, b1 = lin(ks[5], D, Dff)
    w2, b2 = lin(ks[6], Dff, D)
    return dict(
        query=query,
        wq=wq, bq=bq, wk=wk, bk=bk, wv=wv, bv=bv, wo=wo, bo=bo,
        g1=jnp.ones((1, D), jnp.float32), be1=jnp.zeros((1, D), jnp.float32),
        w1=w1, b1=b1, w2=w2, b2=b2,
        g2=jnp.ones((1, D), jnp.float32), be2=jnp.zeros((1, D), jnp.float32),
    )


def reference_forward(Fv, extern_weight, mask, p, compress_len, num_heads, weight_alpha):
    """Pure-JAX f32 reference mirroring the PyTorch module (eval mode)."""
    B, L, D = Fv.shape
    H, C = num_heads, compress_len
    hd = D // H
    x = Fv.astype(jnp.float32)
    query = jnp.broadcast_to(p["query"][None], (B, C, D))
    q = query @ p["wq"] + p["bq"]
    k = x @ p["wk"] + p["bk"]
    v = x @ p["wv"] + p["bv"]

    def split(t, n):
        return t.reshape(B, n, H, hd).transpose(0, 2, 1, 3)

    q, k, v = split(q, C), split(k, L), split(v, L)
    scores = jnp.einsum('bhck,bhlk->bhcl', q, k) / math.sqrt(hd)
    m = mask.astype(bool)
    scores = jnp.where(m[:, None, None, :], scores, -1e9)
    attn = jax.nn.softmax(scores, axis=-1)
    ew = jnp.broadcast_to(extern_weight[:, None, :], (B, C, L))
    mew = jnp.where(m[:, None, :], ew, 0.0)
    mew = mew / (mew.sum(-1, keepdims=True) + 1e-9)
    comb = weight_alpha * attn + (1.0 - weight_alpha) * mew[:, None]
    comb = comb / (comb.sum(-1, keepdims=True) + 1e-9)
    weighted = jnp.einsum('bhcl,bhld->bhcd', comb, v)
    weighted = weighted.transpose(0, 2, 1, 3).reshape(B, C, D)
    attn_out = weighted @ p["wo"] + p["bo"]

    def ln(t, g, b):
        mu = t.mean(-1, keepdims=True)
        var = ((t - mu) ** 2).mean(-1, keepdims=True)
        return (t - mu) * jax.lax.rsqrt(var + 1e-5) * g + b

    x1 = ln(p["query"][None] + attn_out, p["g1"], p["be1"])
    h1 = jnp.maximum(x1 @ p["w1"] + p["b1"], 0.0)
    ff = h1 @ p["w2"] + p["b2"]
    return ln(x1 + ff, p["g2"], p["be2"])


# ------------------------------------------------------------------------------- demo


if __name__ == "__main__":
    B, L, D = 2, 16, 128    # batch, vid_len, dimension (lane-dense D = 128)
    C, H = 8, 8             # compress_len, num_heads  -> head_dim = 16

    key = jax.random.PRNGKey(0)
    k_fv, k_ew, k_p = jax.random.split(key, 3)

    Fv = jax.random.normal(k_fv, (B, L, D), jnp.float32).astype(jnp.bfloat16)
    extern_weight = jax.random.uniform(k_ew, (B, L), jnp.float32)
    # valid-position mask: batch 0 has 12 valid frames, batch 1 all valid
    mask = jnp.stack([jnp.arange(L) < 12,
                      jnp.ones((L,), dtype=jnp.bool_)], axis=0)

    raw_params = init_params(k_p, D, C)
    packed = pack_params(raw_params, H)   # one-time host-side weight packing

    Fv_compress, compress_mask = video_memory_compressor(
        Fv, extern_weight, mask, packed,
        compress_len=C, num_heads=H, weight_alpha=0.5)

    jax.block_until_ready(Fv_compress)
    jax.block_until_ready(compress_mask)

    assert Fv_compress.shape == (B, C, D)
    assert Fv_compress.dtype == Fv.dtype
    assert compress_mask.shape == (B, C)
    assert bool(jnp.all(jnp.isfinite(Fv_compress.astype(jnp.float32))))

    # correctness check against the f32 pure-JAX reference (bf16 kernel tolerance)
    ref = reference_forward(Fv, extern_weight, mask, raw_params, C, H, 0.5)
    max_err = float(jnp.max(jnp.abs(Fv_compress.astype(jnp.float32) - ref)))
    assert max_err < 0.35, f"kernel/reference mismatch: max |diff| = {max_err}"

    print("KERNEL_OK")
</pallas_src>

<mosaic_0001>
module attributes {stable_mosaic.version = 11 : i64} {
  func.func @kernel(%arg0: i32, %arg1: memref<1x16x128xbf16, #tpu.memory_space<vmem>>, %arg2: memref<1x2x16xf32, #tpu.memory_space<vmem>>, %arg3: memref<8x128xf32, #tpu.memory_space<vmem>>, %arg4: memref<8x8x16xbf16, #tpu.memory_space<vmem>>, %arg5: memref<128x256xbf16, #tpu.memory_space<vmem>>, %arg6: memref<1x256xf32, #tpu.memory_space<vmem>>, %arg7: memref<128x128xbf16, #tpu.memory_space<vmem>>, %arg8: memref<1x128xf32, #tpu.memory_space<vmem>>, %arg9: memref<1x128xf32, #tpu.memory_space<vmem>>, %arg10: memref<1x128xf32, #tpu.memory_space<vmem>>, %arg11: memref<128x512xbf16, #tpu.memory_space<vmem>>, %arg12: memref<1x512xf32, #tpu.memory_space<vmem>>, %arg13: memref<512x128xbf16, #tpu.memory_space<vmem>>, %arg14: memref<1x128xf32, #tpu.memory_space<vmem>>, %arg15: memref<1x128xf32, #tpu.memory_space<vmem>>, %arg16: memref<1x128xf32, #tpu.memory_space<vmem>>, %arg17: memref<1x8x128xbf16, #tpu.memory_space<vmem>>) attributes {dimension_semantics = [#tpu.dimension_semantics<parallel>], iteration_bounds = array<i64: 2>, scalar_prefetch = 0 : i64, scratch_operands = 0 : i64, tpu.core_type = #tpu.core_type<tc>, window_params = [{transform_indices = @transform_0, window_bounds = array<i64: 1, 16, 128>}, {transform_indices = @transform_1, window_bounds = array<i64: 1, 2, 16>}, {pipeline_mode = #tpu.pipeline_mode<synchronous>, transform_indices = @transform_2, window_bounds = array<i64: 8, 128>}, {pipeline_mode = #tpu.pipeline_mode<synchronous>, transform_indices = @transform_3, window_bounds = array<i64: 8, 8, 16>}, {pipeline_mode = #tpu.pipeline_mode<synchronous>, transform_indices = @transform_4, window_bounds = array<i64: 128, 256>}, {pipeline_mode = #tpu.pipeline_mode<synchronous>, transform_indices = @transform_5, window_bounds = array<i64: 1, 256>}, {pipeline_mode = #tpu.pipeline_mode<synchronous>, transform_indices = @transform_6, window_bounds = array<i64: 128, 128>}, {pipeline_mode = #tpu.pipeline_mode<synchronous>, transform_indices = @transform_7, window_bounds = array<i64: 1, 128>}, {pipeline_mode = #tpu.pipeline_mode<synchronous>, transform_indices = @transform_8, window_bounds = array<i64: 1, 128>}, {pipeline_mode = #tpu.pipeline_mode<synchronous>, transform_indices = @transform_9, window_bounds = array<i64: 1, 128>}, {pipeline_mode = #tpu.pipeline_mode<synchronous>, transform_indices = @transform_10, window_bounds = array<i64: 128, 512>}, {pipeline_mode = #tpu.pipeline_mode<synchronous>, transform_indices = @transform_11, window_bounds = array<i64: 1, 512>}, {pipeline_mode = #tpu.pipeline_mode<synchronous>, transform_indices = @transform_12, window_bounds = array<i64: 512, 128>}, {pipeline_mode = #tpu.pipeline_mode<synchronous>, transform_indices = @transform_13, window_bounds = array<i64: 1, 128>}, {pipeline_mode = #tpu.pipeline_mode<synchronous>, transform_indices = @transform_14, window_bounds = array<i64: 1, 128>}, {pipeline_mode = #tpu.pipeline_mode<synchronous>, transform_indices = @transform_15, window_bounds = array<i64: 1, 128>}, {transform_indices = @transform_16, window_bounds = array<i64: 1, 8, 128>}]} {
    %c0 = arith.constant 0 : index
    %c0_0 = arith.constant 0 : index
    %c0_1 = arith.constant 0 : index
    %0 = vector.load %arg1[%c0, %c0_0, %c0_1] : memref<1x16x128xbf16, #tpu.memory_space<vmem>>, vector<1x16x128xbf16>
    %1 = vector.shape_cast %0 : vector<1x16x128xbf16> to vector<16x128xbf16>
    %c0_2 = arith.constant 0 : index
    %c0_3 = arith.constant 0 : index
    %2 = vector.load %arg5[%c0_2, %c0_3] : memref<128x256xbf16, #tpu.memory_space<vmem>>, vector<128x256xbf16>
    %cst = arith.constant dense<0.000000e+00> : vector<16x256xf32>
    %3 = tpu.matmul %1, %2, %cst {dimension_numbers = #tpu.dot_dimension_numbers<[1], [0], [0], [1], [0, 0, 1, 1], [], []>} : vector<16x128xbf16>, vector<128x256xbf16>, vector<16x256xf32> -> vector<16x256xf32>
    %c0_4 = arith.constant 0 : index
    %c0_5 = arith.constant 0 : index
    %4 = vector.load %arg6[%c0_4, %c0_5] : memref<1x256xf32, #tpu.memory_space<vmem>>, vector<1x256xf32>
    %5 = vector.broadcast %4 : vector<1x256xf32> to vector<16x256xf32>
    %6 = arith.addf %3, %5 : vector<16x256xf32>
    %7 = arith.truncf %6 : vector<16x256xf32> to vector<16x256xbf16>
    %8 = vector.shape_cast %7 : vector<16x256xbf16> to vector<1x16x256xbf16>
    %c0_6 = arith.constant 0 : index
    %c0_7 = arith.constant 0 : index
    %c0_8 = arith.constant 0 : index
    %9 = vector.load %arg2[%c0_6, %c0_7, %c0_8] : memref<1x2x16xf32, #tpu.memory_space<vmem>>, vector<1x1x16xf32>
    %10 = vector.shape_cast %9 : vector<1x1x16xf32> to vector<1x16xf32>
    %c0_9 = arith.constant 0 : index
    %c1 = arith.constant 1 : index
    %c0_10 = arith.constant 0 : index
    %11 = vector.load %arg2[%c0_9, %c1, %c0_10] : memref<1x2x16xf32, #tpu.memory_space<vmem>>, vector<1x1x16xf32>
    %12 = vector.shape_cast %11 : vector<1x1x16xf32> to vector<1x16xf32>
    %cst_11 = arith.constant 5.000000e-01 : f32
    %13 = vector.broadcast %cst_11 : f32 to vector<1x16xf32>
    %14 = arith.cmpf ogt, %12, %13 : vector<1x16xf32>
    %cst_12 = arith.constant 0.000000e+00 : f32
    %15 = vector.broadcast %cst_12 : f32 to vector<1x16xf32>
    %16 = arith.select %14, %10, %15 : vector<1x16xi1>, vector<1x16xf32>
    %cst_13 = arith.constant dense<0.000000e+00> : vector<1xf32>
    %17 = vector.multi_reduction <add>, %16, %cst_13 [1] : vector<1x16xf32> to vector<1xf32>
    %18 = vector.shape_cast %17 : vector<1xf32> to vector<1x1xf32>
    %cst_14 = arith.constant 9.99999971E-10 : f32
    %19 = vector.broadcast %cst_14 : f32 to vector<1x1xf32>
    %20 = arith.addf %18, %19 : vector<1x1xf32>
    %21 = vector.broadcast %20 : vector<1x1xf32> to vector<1x16xf32>
    %22 = arith.divf %16, %21 : vector<1x16xf32>
    %cst_15 = arith.constant 5.000000e-01 : f32
    %23 = vector.broadcast %cst_15 : f32 to vector<1x16xf32>
    %24 = arith.mulf %23, %22 : vector<1x16xf32>
    %25 = vector.shape_cast %24 : vector<1x16xf32> to vector<1x1x16xf32>
    %26 = vector.shape_cast %14 : vector<1x16xi1> to vector<1x1x16xi1>
    %c0_16 = arith.constant 0 : index
    %c0_17 = arith.constant 0 : index
    %c0_18 = arith.constant 0 : index
    %27 = vector.load %arg4[%c0_16, %c0_17, %c0_18] : memref<8x8x16xbf16, #tpu.memory_space<vmem>>, vector<8x8x16xbf16>
    %28 = vector.shape_cast %27 : vector<8x8x16xbf16> to vector<1x8x8x16xbf16>
    %29 = vector.extract_strided_slice %8 {offsets = [0, 0, 0], sizes = [1, 16, 16], strides = [1, 1, 1]} : vector<1x16x256xbf16> to vector<1x16x16xbf16>
    %30 = vector.extract_strided_slice %8 {offsets = [0, 0, 128], sizes = [1, 16, 16], strides = [1, 1, 1]} : vector<1x16x256xbf16> to vector<1x16x16xbf16>
    %31 = vector.extract_strided_slice %28 {offsets = [0, 0, 0, 0], sizes = [1, 1, 8, 16], strides = [1, 1, 1, 1]} : vector<1x8x8x16xbf16> to vector<1x1x8x16xbf16>
    %32 = vector.shape_cast %31 : vector<1x1x8x16xbf16> to vector<1x8x16xbf16>
    "tpu.trace_start"() <{level = 10 : i32, message = "bck,blk->bcl"}> : () -> ()
    %cst_19 = arith.constant dense<0.000000e+00> : vector<1x8x16xf32>
    %33 = tpu.matmul %32, %29, %cst_19 {dimension_numbers = #tpu.dot_dimension_numbers<[2], [2], [1], [1], [0, 0, 0, 1, 1, 1], [0], [0]>} : vector<1x8x16xbf16>, vector<1x16x16xbf16>, vector<1x8x16xf32> -> vector<1x8x16xf32>
    "tpu.trace_stop"() : () -> ()
    %cst_20 = arith.constant 2.500000e-01 : f32
    %34 = vector.broadcast %cst_20 : f32 to vector<1x8x16xf32>
    %35 = arith.mulf %33, %34 : vector<1x8x16xf32>
    %cst_21 = arith.constant -1.000000e+09 : f32
    %36 = vector.shape_cast %26 : vector<1x1x16xi1> to vector<1x1x16xi1>
    %37 = vector.broadcast %36 : vector<1x1x16xi1> to vector<1x8x16xi1>
    %38 = vector.broadcast %cst_21 : f32 to vector<1x8x16xf32>
    %39 = arith.select %37, %35, %38 : vector<1x8x16xi1>, vector<1x8x16xf32>
    %cst_22 = arith.constant dense<0xFF800000> : vector<1x8xf32>
    %40 = vector.multi_reduction <maximumf>, %39, %cst_22 [2] : vector<1x8x16xf32> to vector<1x8xf32>
    %41 = vector.shape_cast %40 : vector<1x8xf32> to vector<1x8x1xf32>
    %42 = vector.broadcast %41 : vector<1x8x1xf32> to vector<1x8x16xf32>
    %43 = arith.subf %39, %42 : vector<1x8x16xf32>
    %44 = math.exp %43 : vector<1x8x16xf32>
    %cst_23 = arith.constant dense<0.000000e+00> : vector<1x8xf32>
    %45 = vector.multi_reduction <add>, %44, %cst_23 [2] : vector<1x8x16xf32> to vector<1x8xf32>
    %46 = vector.shape_cast %45 : vector<1x8xf32> to vector<1x8x1xf32>
    %47 = tpu.reciprocal %46 {approx = true} : vector<1x8x1xf32> -> vector<1x8x1xf32>
    %48 = vector.broadcast %47 : vector<1x8x1xf32> to vector<1x8x16xf32>
    %49 = arith.mulf %44, %48 : vector<1x8x16xf32>
    %cst_24 = arith.constant 5.000000e-01 : f32
    %50 = vector.broadcast %cst_24 : f32 to vector<1x8x16xf32>
    %51 = arith.mulf %50, %49 : vector<1x8x16xf32>
    %52 = vector.broadcast %25 : vector<1x1x16xf32> to vector<1x8x16xf32>
    %53 = arith.addf %51, %52 : vector<1x8x16xf32>
    %cst_25 = arith.constant dense<0.000000e+00> : vector<1x8xf32>
    %54 = vector.multi_reduction <add>, %53, %cst_25 [2] : vector<1x8x16xf32> to vector<1x8xf32>
    %55 = vector.shape_cast %54 : vector<1x8xf32> to vector<1x8x1xf32>
    %cst_26 = arith.constant 9.99999971E-10 : f32
    %56 = vector.broadcast %cst_26 : f32 to vector<1x8x1xf32>
    %57 = arith.addf %55, %56 : vector<1x8x1xf32>
    %cst_27 = arith.constant 1.000000e+00 : f32
    %58 = vector.broadcast %cst_27 : f32 to vector<1x8x1xf32>
    %59 = arith.divf %58, %57 : vector<1x8x1xf32>
    %60 = vector.broadcast %59 : vector<1x8x1xf32> to vector<1x8x16xf32>
    %61 = arith.mulf %53, %60 : vector<1x8x16xf32>
    %62 = arith.truncf %61 : vector<1x8x16xf32> to vector<1x8x16xbf16>
    "tpu.trace_start"() <{level = 10 : i32, message = "bcl,blk->bck"}> : () -> ()
    %cst_28 = arith.constant dense<0.000000e+00> : vector<1x8x16xf32>
    %63 = tpu.matmul %62, %30, %cst_28 {dimension_numbers = #tpu.dot_dimension_numbers<[2], [1], [1], [2], [0, 0, 0, 1, 1, 2], [0], [0]>} : vector<1x8x16xbf16>, vector<1x16x16xbf16>, vector<1x8x16xf32> -> vector<1x8x16xf32>
    "tpu.trace_stop"() : () -> ()
    %64 = arith.truncf %63 : vector<1x8x16xf32> to vector<1x8x16xbf16>
    %65 = vector.extract_strided_slice %8 {offsets = [0, 0, 16], sizes = [1, 16, 16], strides = [1, 1, 1]} : vector<1x16x256xbf16> to vector<1x16x16xbf16>
    %66 = vector.extract_strided_slice %8 {offsets = [0, 0, 144], sizes = [1, 16, 16], strides = [1, 1, 1]} : vector<1x16x256xbf16> to vector<1x16x16xbf16>
    %67 = vector.extract_strided_slice %28 {offsets = [0, 1, 0, 0], sizes = [1, 1, 8, 16], strides = [1, 1, 1, 1]} : vector<1x8x8x16xbf16> to vector<1x1x8x16xbf16>
    %68 = vector.shape_cast %67 : vector<1x1x8x16xbf16> to vector<1x8x16xbf16>
    "tpu.trace_start"() <{level = 10 : i32, message = "bck,blk->bcl"}> : () -> ()
    %cst_29 = arith.constant dense<0.000000e+00> : vector<1x8x16xf32>
    %69 = tpu.matmul %68, %65, %cst_29 {dimension_numbers = #tpu.dot_dimension_numbers<[2], [2], [1], [1], [0, 0, 0, 1, 1, 1], [0], [0]>} : vector<1x8x16xbf16>, vector<1x16x16xbf16>, vector<1x8x16xf32> -> vector<1x8x16xf32>
    "tpu.trace_stop"() : () -> ()
    %cst_30 = arith.constant 2.500000e-01 : f32
    %70 = vector.broadcast %cst_30 : f32 to vector<1x8x16xf32>
    %71 = arith.mulf %69, %70 : vector<1x8x16xf32>
    %cst_31 = arith.constant -1.000000e+09 : f32
    %72 = vector.shape_cast %26 : vector<1x1x16xi1> to vector<1x1x16xi1>
    %73 = vector.broadcast %72 : vector<1x1x16xi1> to vector<1x8x16xi1>
    %74 = vector.broadcast %cst_31 : f32 to vector<1x8x16xf32>
    %75 = arith.select %73, %71, %74 : vector<1x8x16xi1>, vector<1x8x16xf32>
    %cst_32 = arith.constant dense<0xFF800000> : vector<1x8xf32>
    %76 = vector.multi_reduction <maximumf>, %75, %cst_32 [2] : vector<1x8x16xf32> to vector<1x8xf32>
    %77 = vector.shape_cast %76 : vector<1x8xf32> to vector<1x8x1xf32>
    %78 = vector.broadcast %77 : vector<1x8x1xf32> to vector<1x8x16xf32>
    %79 = arith.subf %75, %78 : vector<1x8x16xf32>
    %80 = math.exp %79 : vector<1x8x16xf32>
    %cst_33 = arith.constant dense<0.000000e+00> : vector<1x8xf32>
    %81 = vector.multi_reduction <add>, %80, %cst_33 [2] : vector<1x8x16xf32> to vector<1x8xf32>
    %82 = vector.shape_cast %81 : vector<1x8xf32> to vector<1x8x1xf32>
    %83 = tpu.reciprocal %82 {approx = true} : vector<1x8x1xf32> -> vector<1x8x1xf32>
    %84 = vector.broadcast %83 : vector<1x8x1xf32> to vector<1x8x16xf32>
    %85 = arith.mulf %80, %84 : vector<1x8x16xf32>
    %cst_34 = arith.constant 5.000000e-01 : f32
    %86 = vector.broadcast %cst_34 : f32 to vector<1x8x16xf32>
    %87 = arith.mulf %86, %85 : vector<1x8x16xf32>
    %88 = vector.broadcast %25 : vector<1x1x16xf32> to vector<1x8x16xf32>
    %89 = arith.addf %87, %88 : vector<1x8x16xf32>
    %cst_35 = arith.constant dense<0.000000e+00> : vector<1x8xf32>
    %90 = vector.multi_reduction <add>, %89, %cst_35 [2] : vector<1x8x16xf32> to vector<1x8xf32>
    %91 = vector.shape_cast %90 : vector<1x8xf32> to vector<1x8x1xf32>
    %cst_36 = arith.constant 9.99999971E-10 : f32
    %92 = vector.broadcast %cst_36 : f32 to vector<1x8x1xf32>
    %93 = arith.addf %91, %92 : vector<1x8x1xf32>
    %cst_37 = arith.constant 1.000000e+00 : f32
    %94 = vector.broadcast %cst_37 : f32 to vector<1x8x1xf32>
    %95 = arith.divf %94, %93 : vector<1x8x1xf32>
    %96 = vector.broadcast %95 : vector<1x8x1xf32> to vector<1x8x16xf32>
    %97 = arith.mulf %89, %96 : vector<1x8x16xf32>
    %98 = arith.truncf %97 : vector<1x8x16xf32> to vector<1x8x16xbf16>
    "tpu.trace_start"() <{level = 10 : i32, message = "bcl,blk->bck"}> : () -> ()
    %cst_38 = arith.constant dense<0.000000e+00> : vector<1x8x16xf32>
    %99 = tpu.matmul %98, %66, %cst_38 {dimension_numbers = #tpu.dot_dimension_numbers<[2], [1], [1], [2], [0, 0, 0, 1, 1, 2], [0], [0]>} : vector<1x8x16xbf16>, vector<1x16x16xbf16>, vector<1x8x16xf32> -> vector<1x8x16xf32>
    "tpu.trace_stop"() : () -> ()
    %100 = arith.truncf %99 : vector<1x8x16xf32> to vector<1x8x16xbf16>
    %101 = vector.extract_strided_slice %8 {offsets = [0, 0, 32], sizes = [1, 16, 16], strides = [1, 1, 1]} : vector<1x16x256xbf16> to vector<1x16x16xbf16>
    %102 = vector.extract_strided_slice %8 {offsets = [0, 0, 160], sizes = [1, 16, 16], strides = [1, 1, 1]} : vector<1x16x256xbf16> to vector<1x16x16xbf16>
    %103 = vector.extract_strided_slice %28 {offsets = [0, 2, 0, 0], sizes = [1, 1, 8, 16], strides = [1, 1, 1, 1]} : vector<1x8x8x16xbf16> to vector<1x1x8x16xbf16>
    %104 = vector.shape_cast %103 : vector<1x1x8x16xbf16> to vector<1x8x16xbf16>
    "tpu.trace_start"() <{level = 10 : i32, message = "bck,blk->bcl"}> : () -> ()
    %cst_39 = arith.constant dense<0.000000e+00> : vector<1x8x16xf32>
    %105 = tpu.matmul %104, %101, %cst_39 {dimension_numbers = #tpu.dot_dimension_numbers<[2], [2], [1], [1], [0, 0, 0, 1, 1, 1], [0], [0]>} : vector<1x8x16xbf16>, vector<1x16x16xbf16>, vector<1x8x16xf32> -> vector<1x8x16xf32>
    "tpu.trace_stop"() : () -> ()
    %cst_40 = arith.constant 2.500000e-01 : f32
    %106 = vector.broadcast %cst_40 : f32 to vector<1x8x16xf32>
    %107 = arith.mulf %105, %106 : vector<1x8x16xf32>
    %cst_41 = arith.constant -1.000000e+09 : f32
    %108 = vector.shape_cast %26 : vector<1x1x16xi1> to vector<1x1x16xi1>
    %109 = vector.broadcast %108 : vector<1x1x16xi1> to vector<1x8x16xi1>
    %110 = vector.broadcast %cst_41 : f32 to vector<1x8x16xf32>
    %111 = arith.select %109, %107, %110 : vector<1x8x16xi1>, vector<1x8x16xf32>
    %cst_42 = arith.constant dense<0xFF800000> : vector<1x8xf32>
    %112 = vector.multi_reduction <maximumf>, %111, %cst_42 [2] : vector<1x8x16xf32> to vector<1x8xf32>
    %113 = vector.shape_cast %112 : vector<1x8xf32> to vector<1x8x1xf32>
    %114 = vector.broadcast %113 : vector<1x8x1xf32> to vector<1x8x16xf32>
    %115 = arith.subf %111, %114 : vector<1x8x16xf32>
    %116 = math.exp %115 : vector<1x8x16xf32>
    %cst_43 = arith.constant dense<0.000000e+00> : vector<1x8xf32>
    %117 = vector.multi_reduction <add>, %116, %cst_43 [2] : vector<1x8x16xf32> to vector<1x8xf32>
    %118 = vector.shape_cast %117 : vector<1x8xf32> to vector<1x8x1xf32>
    %119 = tpu.reciprocal %118 {approx = true} : vector<1x8x1xf32> -> vector<1x8x1xf32>
    %120 = vector.broadcast %119 : vector<1x8x1xf32> to vector<1x8x16xf32>
    %121 = arith.mulf %116, %120 : vector<1x8x16xf32>
    %cst_44 = arith.constant 5.000000e-01 : f32
    %122 = vector.broadcast %cst_44 : f32 to vector<1x8x16xf32>
    %123 = arith.mulf %122, %121 : vector<1x8x16xf32>
    %124 = vector.broadcast %25 : vector<1x1x16xf32> to vector<1x8x16xf32>
    %125 = arith.addf %123, %124 : vector<1x8x16xf32>
    %cst_45 = arith.constant dense<0.000000e+00> : vector<1x8xf32>
    %126 = vector.multi_reduction <add>, %125, %cst_45 [2] : vector<1x8x16xf32> to vector<1x8xf32>
    %127 = vector.shape_cast %126 : vector<1x8xf32> to vector<1x8x1xf32>
    %cst_46 = arith.constant 9.99999971E-10 : f32
    %128 = vector.broadcast %cst_46 : f32 to vector<1x8x1xf32>
    %129 = arith.addf %127, %128 : vector<1x8x1xf32>
    %cst_47 = arith.constant 1.000000e+00 : f32
    %130 = vector.broadcast %cst_47 : f32 to vector<1x8x1xf32>
    %131 = arith.divf %130, %129 : vector<1x8x1xf32>
    %132 = vector.broadcast %131 : vector<1x8x1xf32> to vector<1x8x16xf32>
    %133 = arith.mulf %125, %132 : vector<1x8x16xf32>
    %134 = arith.truncf %133 : vector<1x8x16xf32> to vector<1x8x16xbf16>
    "tpu.trace_start"() <{level = 10 : i32, message = "bcl,blk->bck"}> : () -> ()
    %cst_48 = arith.constant dense<0.000000e+00> : vector<1x8x16xf32>
    %135 = tpu.matmul %134, %102, %cst_48 {dimension_numbers = #tpu.dot_dimension_numbers<[2], [1], [1], [2], [0, 0, 0, 1, 1, 2], [0], [0]>} : vector<1x8x16xbf16>, vector<1x16x16xbf16>, vector<1x8x16xf32> -> vector<1x8x16xf32>
    "tpu.trace_stop"() : () -> ()
    %136 = arith.truncf %135 : vector<1x8x16xf32> to vector<1x8x16xbf16>
    %137 = vector.extract_strided_slice %8 {offsets = [0, 0, 48], sizes = [1, 16, 16], strides = [1, 1, 1]} : vector<1x16x256xbf16> to vector<1x16x16xbf16>
    %138 = vector.extract_strided_slice %8 {offsets = [0, 0, 176], sizes = [1, 16, 16], strides = [1, 1, 1]} : vector<1x16x256xbf16> to vector<1x16x16xbf16>
    %139 = vector.extract_strided_slice %28 {offsets = [0, 3, 0, 0], sizes = [1, 1, 8, 16], strides = [1, 1, 1, 1]} : vector<1x8x8x16xbf16> to vector<1x1x8x16xbf16>
    %140 = vector.shape_cast %139 : vector<1x1x8x16xbf16> to vector<1x8x16xbf16>
    "tpu.trace_start"() <{level = 10 : i32, message = "bck,blk->bcl"}> : () -> ()
    %cst_49 = arith.constant dense<0.000000e+00> : vector<1x8x16xf32>
    %141 = tpu.matmul %140, %137, %cst_49 {dimension_numbers = #tpu.dot_dimension_numbers<[2], [2], [1], [1], [0, 0, 0, 1, 1, 1], [0], [0]>} : vector<1x8x16xbf16>, vector<1x16x16xbf16>, vector<1x8x16xf32> -> vector<1x8x16xf32>
    "tpu.trace_stop"() : () -> ()
    %cst_50 = arith.constant 2.500000e-01 : f32
    %142 = vector.broadcast %cst_50 : f32 to vector<1x8x16xf32>
    %143 = arith.mulf %141, %142 : vector<1x8x16xf32>
    %cst_51 = arith.constant -1.000000e+09 : f32
    %144 = vector.shape_cast %26 : vector<1x1x16xi1> to vector<1x1x16xi1>
    %145 = vector.broadcast %144 : vector<1x1x16xi1> to vector<1x8x16xi1>
    %146 = vector.broadcast %cst_51 : f32 to vector<1x8x16xf32>
    %147 = arith.select %145, %143, %146 : vector<1x8x16xi1>, vector<1x8x16xf32>
    %cst_52 = arith.constant dense<0xFF800000> : vector<1x8xf32>
    %148 = vector.multi_reduction <maximumf>, %147, %cst_52 [2] : vector<1x8x16xf32> to vector<1x8xf32>
    %149 = vector.shape_cast %148 : vector<1x8xf32> to vector<1x8x1xf32>
    %150 = vector.broadcast %149 : vector<1x8x1xf32> to vector<1x8x16xf32>
    %151 = arith.subf %147, %150 : vector<1x8x16xf32>
    %152 = math.exp %151 : vector<1x8x16xf32>
    %cst_53 = arith.constant dense<0.000000e+00> : vector<1x8xf32>
    %153 = vector.multi_reduction <add>, %152, %cst_53 [2] : vector<1x8x16xf32> to vector<1x8xf32>
    %154 = vector.shape_cast %153 : vector<1x8xf32> to vector<1x8x1xf32>
    %155 = tpu.reciprocal %154 {approx = true} : vector<1x8x1xf32> -> vector<1x8x1xf32>
    %156 = vector.broadcast %155 : vector<1x8x1xf32> to vector<1x8x16xf32>
    %157 = arith.mulf %152, %156 : vector<1x8x16xf32>
    %cst_54 = arith.constant 5.000000e-01 : f32
    %158 = vector.broadcast %cst_54 : f32 to vector<1x8x16xf32>
    %159 = arith.mulf %158, %157 : vector<1x8x16xf32>
    %160 = vector.broadcast %25 : vector<1x1x16xf32> to vector<1x8x16xf32>
    %161 = arith.addf %159, %160 : vector<1x8x16xf32>
    %cst_55 = arith.constant dense<0.000000e+00> : vector<1x8xf32>
    %162 = vector.multi_reduction <add>, %161, %cst_55 [2] : vector<1x8x16xf32> to vector<1x8xf32>
    %163 = vector.shape_cast %162 : vector<1x8xf32> to vector<1x8x1xf32>
    %cst_56 = arith.constant 9.99999971E-10 : f32
    %164 = vector.broadcast %cst_56 : f32 to vector<1x8x1xf32>
    %165 = arith.addf %163, %164 : vector<1x8x1xf32>
    %cst_57 = arith.constant 1.000000e+00 : f32
    %166 = vector.broadcast %cst_57 : f32 to vector<1x8x1xf32>
    %167 = arith.divf %166, %165 : vector<1x8x1xf32>
    %168 = vector.broadcast %167 : vector<1x8x1xf32> to vector<1x8x16xf32>
    %169 = arith.mulf %161, %168 : vector<1x8x16xf32>
    %170 = arith.truncf %169 : vector<1x8x16xf32> to vector<1x8x16xbf16>
    "tpu.trace_start"() <{level = 10 : i32, message = "bcl,blk->bck"}> : () -> ()
    %cst_58 = arith.constant dense<0.000000e+00> : vector<1x8x16xf32>
    %171 = tpu.matmul %170, %138, %cst_58 {dimension_numbers = #tpu.dot_dimension_numbers<[2], [1], [1], [2], [0, 0, 0, 1, 1, 2], [0], [0]>} : vector<1x8x16xbf16>, vector<1x16x16xbf16>, vector<1x8x16xf32> -> vector<1x8x16xf32>
    "tpu.trace_stop"() : () -> ()
    %172 = arith.truncf %171 : vector<1x8x16xf32> to vector<1x8x16xbf16>
    %173 = vector.extract_strided_slice %8 {offsets = [0, 0, 64], sizes = [1, 16, 16], strides = [1, 1, 1]} : vector<1x16x256xbf16> to vector<1x16x16xbf16>
    %174 = vector.extract_strided_slice %8 {offsets = [0, 0, 192], sizes = [1, 16, 16], strides = [1, 1, 1]} : vector<1x16x256xbf16> to vector<1x16x16xbf16>
    %175 = vector.extract_strided_slice %28 {offsets = [0, 4, 0, 0], sizes = [1, 1, 8, 16], strides = [1, 1, 1, 1]} : vector<1x8x8x16xbf16> to vector<1x1x8x16xbf16>
    %176 = vector.shape_cast %175 : vector<1x1x8x16xbf16> to vector<1x8x16xbf16>
    "tpu.trace_start"() <{level = 10 : i32, message = "bck,blk->bcl"}> : () -> ()
    %cst_59 = arith.constant dense<0.000000e+00> : vector<1x8x16xf32>
    %177 = tpu.matmul %176, %173, %cst_59 {dimension_numbers = #tpu.dot_dimension_numbers<[2], [2], [1], [1], [0, 0, 0, 1, 1, 1], [0], [0]>} : vector<1x8x16xbf16>, vector<1x16x16xbf16>, vector<1x8x16xf32> -> vector<1x8x16xf32>
    "tpu.trace_stop"() : () -> ()
    %cst_60 = arith.constant 2.500000e-01 : f32
    %178 = vector.broadcast %cst_60 : f32 to vector<1x8x16xf32>
    %179 = arith.mulf %177, %178 : vector<1x8x16xf32>
    %cst_61 = arith.constant -1.000000e+09 : f32
    %180 = vector.shape_cast %26 : vector<1x1x16xi1> to vector<1x1x16xi1>
    %181 = vector.broadcast %180 : vector<1x1x16xi1> to vector<1x8x16xi1>
    %182 = vector.broadcast %cst_61 : f32 to vector<1x8x16xf32>
    %183 = arith.select %181, %179, %182 : vector<1x8x16xi1>, vector<1x8x16xf32>
    %cst_62 = arith.constant dense<0xFF800000> : vector<1x8xf32>
    %184 = vector.multi_reduction <maximumf>, %183, %cst_62 [2] : vector<1x8x16xf32> to vector<1x8xf32>
    %185 = vector.shape_cast %184 : vector<1x8xf32> to vector<1x8x1xf32>
    %186 = vector.broadcast %185 : vector<1x8x1xf32> to vector<1x8x16xf32>
    %187 = arith.subf %183, %186 : vector<1x8x16xf32>
    %188 = math.exp %187 : vector<1x8x16xf32>
    %cst_63 = arith.constant dense<0.000000e+00> : vector<1x8xf32>
    %189 = vector.multi_reduction <add>, %188, %cst_63 [2] : vector<1x8x16xf32> to vector<1x8xf32>
    %190 = vector.shape_cast %189 : vector<1x8xf32> to vector<1x8x1xf32>
    %191 = tpu.reciprocal %190 {approx = true} : vector<1x8x1xf32> -> vector<1x8x1xf32>
    %192 = vector.broadcast %191 : vector<1x8x1xf32> to vector<1x8x16xf32>
    %193 = arith.mulf %188, %192 : vector<1x8x16xf32>
    %cst_64 = arith.constant 5.000000e-01 : f32
    %194 = vector.broadcast %cst_64 : f32 to vector<1x8x16xf32>
    %195 = arith.mulf %194, %193 : vector<1x8x16xf32>
    %196 = vector.broadcast %25 : vector<1x1x16xf32> to vector<1x8x16xf32>
    %197 = arith.addf %195, %196 : vector<1x8x16xf32>
    %cst_65 = arith.constant dense<0.000000e+00> : vector<1x8xf32>
    %198 = vector.multi_reduction <add>, %197, %cst_65 [2] : vector<1x8x16xf32> to vector<1x8xf32>
    %199 = vector.shape_cast %198 : vector<1x8xf32> to vector<1x8x1xf32>
    %cst_66 = arith.constant 9.99999971E-10 : f32
    %200 = vector.broadcast %cst_66 : f32 to vector<1x8x1xf32>
    %201 = arith.addf %199, %200 : vector<1x8x1xf32>
    %cst_67 = arith.constant 1.000000e+00 : f32
    %202 = vector.broadcast %cst_67 : f32 to vector<1x8x1xf32>
    %203 = arith.divf %202, %201 : vector<1x8x1xf32>
    %204 = vector.broadcast %203 : vector<1x8x1xf32> to vector<1x8x16xf32>
    %205 = arith.mulf %197, %204 : vector<1x8x16xf32>
    %206 = arith.truncf %205 : vector<1x8x16xf32> to vector<1x8x16xbf16>
    "tpu.trace_start"() <{level = 10 : i32, message = "bcl,blk->bck"}> : () -> ()
    %cst_68 = arith.constant dense<0.000000e+00> : vector<1x8x16xf32>
    %207 = tpu.matmul %206, %174, %cst_68 {dimension_numbers = #tpu.dot_dimension_numbers<[2], [1], [1], [2], [0, 0, 0, 1, 1, 2], [0], [0]>} : vector<1x8x16xbf16>, vector<1x16x16xbf16>, vector<1x8x16xf32> -> vector<1x8x16xf32>
    "tpu.trace_stop"() : () -> ()
    %208 = arith.truncf %207 : vector<1x8x16xf32> to vector<1x8x16xbf16>
    %209 = vector.extract_strided_slice %8 {offsets = [0, 0, 80], sizes = [1, 16, 16], strides = [1, 1, 1]} : vector<1x16x256xbf16> to vector<1x16x16xbf16>
    %210 = vector.extract_strided_slice %8 {offsets = [0, 0, 208], sizes = [1, 16, 16], strides = [1, 1, 1]} : vector<1x16x256xbf16> to vector<1x16x16xbf16>
    %211 = vector.extract_strided_slice %28 {offsets = [0, 5, 0, 0], sizes = [1, 1, 8, 16], strides = [1, 1, 1, 1]} : vector<1x8x8x16xbf16> to vector<1x1x8x16xbf16>
    %212 = vector.shape_cast %211 : vector<1x1x8x16xbf16> to vector<1x8x16xbf16>
    "tpu.trace_start"() <{level = 10 : i32, message = "bck,blk->bcl"}> : () -> ()
    %cst_69 = arith.constant dense<0.000000e+00> : vector<1x8x16xf32>
    %213 = tpu.matmul %212, %209, %cst_69 {dimension_numbers = #tpu.dot_dimension_numbers<[2], [2], [1], [1], [0, 0, 0, 1, 1, 1], [0], [0]>} : vector<1x8x16xbf16>, vector<1x16x16xbf16>, vector<1x8x16xf32> -> vector<1x8x16xf32>
    "tpu.trace_stop"() : () -> ()
    %cst_70 = arith.constant 2.500000e-01 : f32
    %214 = vector.broadcast %cst_70 : f32 to vector<1x8x16xf32>
    %215 = arith.mulf %213, %214 : vector<1x8x16xf32>
    %cst_71 = arith.constant -1.000000e+09 : f32
    %216 = vector.shape_cast %26 : vector<1x1x16xi1> to vector<1x1x16xi1>
    %217 = vector.broadcast %216 : vector<1x1x16xi1> to vector<1x8x16xi1>
    %218 = vector.broadcast %cst_71 : f32 to vector<1x8x16xf32>
    %219 = arith.select %217, %215, %218 : vector<1x8x16xi1>, vector<1x8x16xf32>
    %cst_72 = arith.constant dense<0xFF800000> : vector<1x8xf32>
    %220 = vector.multi_reduction <maximumf>, %219, %cst_72 [2] : vector<1x8x16xf32> to vector<1x8xf32>
    %221 = vector.shape_cast %220 : vector<1x8xf32> to vector<1x8x1xf32>
    %222 = vector.broadcast %221 : vector<1x8x1xf32> to vector<1x8x16xf32>
    %223 = arith.subf %219, %222 : vector<1x8x16xf32>
    %224 = math.exp %223 : vector<1x8x16xf32>
    %cst_73 = arith.constant dense<0.000000e+00> : vector<1x8xf32>
    %225 = vector.multi_reduction <add>, %224, %cst_73 [2] : vector<1x8x16xf32> to vector<1x8xf32>
    %226 = vector.shape_cast %225 : vector<1x8xf32> to vector<1x8x1xf32>
    %227 = tpu.reciprocal %226 {approx = true} : vector<1x8x1xf32> -> vector<1x8x1xf32>
    %228 = vector.broadcast %227 : vector<1x8x1xf32> to vector<1x8x16xf32>
    %229 = arith.mulf %224, %228 : vector<1x8x16xf32>
    %cst_74 = arith.constant 5.000000e-01 : f32
    %230 = vector.broadcast %cst_74 : f32 to vector<1x8x16xf32>
    %231 = arith.mulf %230, %229 : vector<1x8x16xf32>
    %232 = vector.broadcast %25 : vector<1x1x16xf32> to vector<1x8x16xf32>
    %233 = arith.addf %231, %232 : vector<1x8x16xf32>
    %cst_75 = arith.constant dense<0.000000e+00> : vector<1x8xf32>
    %234 = vector.multi_reduction <add>, %233, %cst_75 [2] : vector<1x8x16xf32> to vector<1x8xf32>
    %235 = vector.shape_cast %234 : vector<1x8xf32> to vector<1x8x1xf32>
    %cst_76 = arith.constant 9.99999971E-10 : f32
    %236 = vector.broadcast %cst_76 : f32 to vector<1x8x1xf32>
    %237 = arith.addf %235, %236 : vector<1x8x1xf32>
    %cst_77 = arith.constant 1.000000e+00 : f32
    %238 = vector.broadcast %cst_77 : f32 to vector<1x8x1xf32>
    %239 = arith.divf %238, %237 : vector<1x8x1xf32>
    %240 = vector.broadcast %239 : vector<1x8x1xf32> to vector<1x8x16xf32>
    %241 = arith.mulf %233, %240 : vector<1x8x16xf32>
    %242 = arith.truncf %241 : vector<1x8x16xf32> to vector<1x8x16xbf16>
    "tpu.trace_start"() <{level = 10 : i32, message = "bcl,blk->bck"}> : () -> ()
    %cst_78 = arith.constant dense<0.000000e+00> : vector<1x8x16xf32>
    %243 = tpu.matmul %242, %210, %cst_78 {dimension_numbers = #tpu.dot_dimension_numbers<[2], [1], [1], [2], [0, 0, 0, 1, 1, 2], [0], [0]>} : vector<1x8x16xbf16>, vector<1x16x16xbf16>, vector<1x8x16xf32> -> vector<1x8x16xf32>
    "tpu.trace_stop"() : () -> ()
    %244 = arith.truncf %243 : vector<1x8x16xf32> to vector<1x8x16xbf16>
    %245 = vector.extract_strided_slice %8 {offsets = [0, 0, 96], sizes = [1, 16, 16], strides = [1, 1, 1]} : vector<1x16x256xbf16> to vector<1x16x16xbf16>
    %246 = vector.extract_strided_slice %8 {offsets = [0, 0, 224], sizes = [1, 16, 16], strides = [1, 1, 1]} : vector<1x16x256xbf16> to vector<1x16x16xbf16>
    %247 = vector.extract_strided_slice %28 {offsets = [0, 6, 0, 0], sizes = [1, 1, 8, 16], strides = [1, 1, 1, 1]} : vector<1x8x8x16xbf16> to vector<1x1x8x16xbf16>
    %248 = vector.shape_cast %247 : vector<1x1x8x16xbf16> to vector<1x8x16xbf16>
    "tpu.trace_start"() <{level = 10 : i32, message = "bck,blk->bcl"}> : () -> ()
    %cst_79 = arith.constant dense<0.000000e+00> : vector<1x8x16xf32>
    %249 = tpu.matmul %248, %245, %cst_79 {dimension_numbers = #tpu.dot_dimension_numbers<[2], [2], [1], [1], [0, 0, 0, 1, 1, 1], [0], [0]>} : vector<1x8x16xbf16>, vector<1x16x16xbf16>, vector<1x8x16xf32> -> vector<1x8x16xf32>
    "tpu.trace_stop"() : () -> ()
    %cst_80 = arith.constant 2.500000e-01 : f32
    %250 = vector.broadcast %cst_80 : f32 to vector<1x8x16xf32>
    %251 = arith.mulf %249, %250 : vector<1x8x16xf32>
    %cst_81 = arith.constant -1.000000e+09 : f32
    %252 = vector.shape_cast %26 : vector<1x1x16xi1> to vector<1x1x16xi1>
    %253 = vector.broadcast %252 : vector<1x1x16xi1> to vector<1x8x16xi1>
    %254 = vector.broadcast %cst_81 : f32 to vector<1x8x16xf32>
    %255 = arith.select %253, %251, %254 : vector<1x8x16xi1>, vector<1x8x16xf32>
    %cst_82 = arith.constant dense<0xFF800000> : vector<1x8xf32>
    %256 = vector.multi_reduction <maximumf>, %255, %cst_82 [2] : vector<1x8x16xf32> to vector<1x8xf32>
    %257 = vector.shape_cast %256 : vector<1x8xf32> to vector<1x8x1xf32>
    %258 = vector.broadcast %257 : vector<1x8x1xf32> to vector<1x8x16xf32>
    %259 = arith.subf %255, %258 : vector<1x8x16xf32>
    %260 = math.exp %259 : vector<1x8x16xf32>
    %cst_83 = arith.constant dense<0.000000e+00> : vector<1x8xf32>
    %261 = vector.multi_reduction <add>, %260, %cst_83 [2] : vector<1x8x16xf32> to vector<1x8xf32>
    %262 = vector.shape_cast %261 : vector<1x8xf32> to vector<1x8x1xf32>
    %263 = tpu.reciprocal %262 {approx = true} : vector<1x8x1xf32> -> vector<1x8x1xf32>
    %264 = vector.broadcast %263 : vector<1x8x1xf32> to vector<1x8x16xf32>
    %265 = arith.mulf %260, %264 : vector<1x8x16xf32>
    %cst_84 = arith.constant 5.000000e-01 : f32
    %266 = vector.broadcast %cst_84 : f32 to vector<1x8x16xf32>
    %267 = arith.mulf %266, %265 : vector<1x8x16xf32>
    %268 = vector.broadcast %25 : vector<1x1x16xf32> to vector<1x8x16xf32>
    %269 = arith.addf %267, %268 : vector<1x8x16xf32>
    %cst_85 = arith.constant dense<0.000000e+00> : vector<1x8xf32>
    %270 = vector.multi_reduction <add>, %269, %cst_85 [2] : vector<1x8x16xf32> to vector<1x8xf32>
    %271 = vector.shape_cast %270 : vector<1x8xf32> to vector<1x8x1xf32>
    %cst_86 = arith.constant 9.99999971E-10 : f32
    %272 = vector.broadcast %cst_86 : f32 to vector<1x8x1xf32>
    %273 = arith.addf %271, %272 : vector<1x8x1xf32>
    %cst_87 = arith.constant 1.000000e+00 : f32
    %274 = vector.broadcast %cst_87 : f32 to vector<1x8x1xf32>
    %275 = arith.divf %274, %273 : vector<1x8x1xf32>
    %276 = vector.broadcast %275 : vector<1x8x1xf32> to vector<1x8x16xf32>
    %277 = arith.mulf %269, %276 : vector<1x8x16xf32>
    %278 = arith.truncf %277 : vector<1x8x16xf32> to vector<1x8x16xbf16>
    "tpu.trace_start"() <{level = 10 : i32, message = "bcl,blk->bck"}> : () -> ()
    %cst_88 = arith.constant dense<0.000000e+00> : vector<1x8x16xf32>
    %279 = tpu.matmul %278, %246, %cst_88 {dimension_numbers = #tpu.dot_dimension_numbers<[2], [1], [1], [2], [0, 0, 0, 1, 1, 2], [0], [0]>} : vector<1x8x16xbf16>, vector<1x16x16xbf16>, vector<1x8x16xf32> -> vector<1x8x16xf32>
    "tpu.trace_stop"() : () -> ()
    %280 = arith.truncf %279 : vector<1x8x16xf32> to vector<1x8x16xbf16>
    %281 = vector.extract_strided_slice %8 {offsets = [0, 0, 112], sizes = [1, 16, 16], strides = [1, 1, 1]} : vector<1x16x256xbf16> to vector<1x16x16xbf16>
    %282 = vector.extract_strided_slice %8 {offsets = [0, 0, 240], sizes = [1, 16, 16], strides = [1, 1, 1]} : vector<1x16x256xbf16> to vector<1x16x16xbf16>
    %283 = vector.extract_strided_slice %28 {offsets = [0, 7, 0, 0], sizes = [1, 1, 8, 16], strides = [1, 1, 1, 1]} : vector<1x8x8x16xbf16> to vector<1x1x8x16xbf16>
    %284 = vector.shape_cast %283 : vector<1x1x8x16xbf16> to vector<1x8x16xbf16>
    "tpu.trace_start"() <{level = 10 : i32, message = "bck,blk->bcl"}> : () -> ()
    %cst_89 = arith.constant dense<0.000000e+00> : vector<1x8x16xf32>
    %285 = tpu.matmul %284, %281, %cst_89 {dimension_numbers = #tpu.dot_dimension_numbers<[2], [2], [1], [1], [0, 0, 0, 1, 1, 1], [0], [0]>} : vector<1x8x16xbf16>, vector<1x16x16xbf16>, vector<1x8x16xf32> -> vector<1x8x16xf32>
    "tpu.trace_stop"() : () -> ()
    %cst_90 = arith.constant 2.500000e-01 : f32
    %286 = vector.broadcast %cst_90 : f32 to vector<1x8x16xf32>
    %287 = arith.mulf %285, %286 : vector<1x8x16xf32>
    %cst_91 = arith.constant -1.000000e+09 : f32
    %288 = vector.shape_cast %26 : vector<1x1x16xi1> to vector<1x1x16xi1>
    %289 = vector.broadcast %288 : vector<1x1x16xi1> to vector<1x8x16xi1>
    %290 = vector.broadcast %cst_91 : f32 to vector<1x8x16xf32>
    %291 = arith.select %289, %287, %290 : vector<1x8x16xi1>, vector<1x8x16xf32>
    %cst_92 = arith.constant dense<0xFF800000> : vector<1x8xf32>
    %292 = vector.multi_reduction <maximumf>, %291, %cst_92 [2] : vector<1x8x16xf32> to vector<1x8xf32>
    %293 = vector.shape_cast %292 : vector<1x8xf32> to vector<1x8x1xf32>
    %294 = vector.broadcast %293 : vector<1x8x1xf32> to vector<1x8x16xf32>
    %295 = arith.subf %291, %294 : vector<1x8x16xf32>
    %296 = math.exp %295 : vector<1x8x16xf32>
    %cst_93 = arith.constant dense<0.000000e+00> : vector<1x8xf32>
    %297 = vector.multi_reduction <add>, %296, %cst_93 [2] : vector<1x8x16xf32> to vector<1x8xf32>
    %298 = vector.shape_cast %297 : vector<1x8xf32> to vector<1x8x1xf32>
    %299 = tpu.reciprocal %298 {approx = true} : vector<1x8x1xf32> -> vector<1x8x1xf32>
    %300 = vector.broadcast %299 : vector<1x8x1xf32> to vector<1x8x16xf32>
    %301 = arith.mulf %296, %300 : vector<1x8x16xf32>
    %cst_94 = arith.constant 5.000000e-01 : f32
    %302 = vector.broadcast %cst_94 : f32 to vector<1x8x16xf32>
    %303 = arith.mulf %302, %301 : vector<1x8x16xf32>
    %304 = vector.broadcast %25 : vector<1x1x16xf32> to vector<1x8x16xf32>
    %305 = arith.addf %303, %304 : vector<1x8x16xf32>
    %cst_95 = arith.constant dense<0.000000e+00> : vector<1x8xf32>
    %306 = vector.multi_reduction <add>, %305, %cst_95 [2] : vector<1x8x16xf32> to vector<1x8xf32>
    %307 = vector.shape_cast %306 : vector<1x8xf32> to vector<1x8x1xf32>
    %cst_96 = arith.constant 9.99999971E-10 : f32
    %308 = vector.broadcast %cst_96 : f32 to vector<1x8x1xf32>
    %309 = arith.addf %307, %308 : vector<1x8x1xf32>
    %cst_97 = arith.constant 1.000000e+00 : f32
    %310 = vector.broadcast %cst_97 : f32 to vector<1x8x1xf32>
    %311 = arith.divf %310, %309 : vector<1x8x1xf32>
    %312 = vector.broadcast %311 : vector<1x8x1xf32> to vector<1x8x16xf32>
    %313 = arith.mulf %305, %312 : vector<1x8x16xf32>
    %314 = arith.truncf %313 : vector<1x8x16xf32> to vector<1x8x16xbf16>
    "tpu.trace_start"() <{level = 10 : i32, message = "bcl,blk->bck"}> : () -> ()
    %cst_98 = arith.constant dense<0.000000e+00> : vector<1x8x16xf32>
    %315 = tpu.matmul %314, %282, %cst_98 {dimension_numbers = #tpu.dot_dimension_numbers<[2], [1], [1], [2], [0, 0, 0, 1, 1, 2], [0], [0]>} : vector<1x8x16xbf16>, vector<1x16x16xbf16>, vector<1x8x16xf32> -> vector<1x8x16xf32>
    "tpu.trace_stop"() : () -> ()
    %316 = arith.truncf %315 : vector<1x8x16xf32> to vector<1x8x16xbf16>
    %317 = tpu.concatenate %64, %100, %136, %172, %208, %244, %280, %316 in 2 : vector<1x8x16xbf16>, vector<1x8x16xbf16>, vector<1x8x16xbf16>, vector<1x8x16xbf16>, vector<1x8x16xbf16>, vector<1x8x16xbf16>, vector<1x8x16xbf16>, vector<1x8x16xbf16> -> vector<1x8x128xbf16>
    %318 = vector.shape_cast %317 : vector<1x8x128xbf16> to vector<8x128xbf16>
    %c0_99 = arith.constant 0 : index
    %c0_100 = arith.constant 0 : index
    %319 = vector.load %arg7[%c0_99, %c0_100] : memref<128x128xbf16, #tpu.memory_space<vmem>>, vector<128x128xbf16>
    %cst_101 = arith.constant dense<0.000000e+00> : vector<8x128xf32>
    %320 = tpu.matmul %318, %319, %cst_101 {dimension_numbers = #tpu.dot_dimension_numbers<[1], [0], [0], [1], [0, 0, 1, 1], [], []>} : vector<8x128xbf16>, vector<128x128xbf16>, vector<8x128xf32> -> vector<8x128xf32>
    %c0_102 = arith.constant 0 : index
    %c0_103 = arith.constant 0 : index
    %321 = vector.load %arg8[%c0_102, %c0_103] : memref<1x128xf32, #tpu.memory_space<vmem>>, vector<1x128xf32>
    %322 = vector.broadcast %321 : vector<1x128xf32> to vector<8x128xf32>
    %323 = arith.addf %320, %322 : vector<8x128xf32>
    %324 = vector.shape_cast %323 : vector<8x128xf32> to vector<1x8x128xf32>
    %c0_104 = arith.constant 0 : index
    %c0_105 = arith.constant 0 : index
    %325 = vector.load %arg3[%c0_104, %c0_105] : memref<8x128xf32, #tpu.memory_space<vmem>>, vector<8x128xf32>
    %326 = vector.shape_cast %325 : vector<8x128xf32> to vector<1x8x128xf32>
    %327 = arith.addf %324, %326 : vector<1x8x128xf32>
    %328 = vector.shape_cast %327 : vector<1x8x128xf32> to vector<8x128xf32>
    %cst_106 = arith.constant dense<0.000000e+00> : vector<8xf32>
    %329 = vector.multi_reduction <add>, %328, %cst_106 [1] : vector<8x128xf32> to vector<8xf32>
    %330 = vector.shape_cast %329 : vector<8xf32> to vector<8x1xf32>
    %cst_107 = arith.constant 1.280000e+02 : f32
    %331 = vector.broadcast %cst_107 : f32 to vector<8x1xf32>
    %332 = arith.divf %330, %331 : vector<8x1xf32>
    %333 = vector.broadcast %332 : vector<8x1xf32> to vector<8x128xf32>
    %334 = arith.subf %328, %333 : vector<8x128xf32>
    %335 = arith.mulf %334, %334 : vector<8x128xf32>
    %cst_108 = arith.constant dense<0.000000e+00> : vector<8xf32>
    %336 = vector.multi_reduction <add>, %335, %cst_108 [1] : vector<8x128xf32> to vector<8xf32>
    %337 = vector.shape_cast %336 : vector<8xf32> to vector<8x1xf32>
    %cst_109 = arith.constant 1.280000e+02 : f32
    %338 = vector.broadcast %cst_109 : f32 to vector<8x1xf32>
    %339 = arith.divf %337, %338 : vector<8x1xf32>
    %340 = vector.broadcast %332 : vector<8x1xf32> to vector<8x128xf32>
    %341 = arith.subf %328, %340 : vector<8x128xf32>
    %cst_110 = arith.constant 9.99999974E-6 : f32
    %342 = vector.broadcast %cst_110 : f32 to vector<8x1xf32>
    %343 = arith.addf %339, %342 : vector<8x1xf32>
    %344 = math.rsqrt %343 : vector<8x1xf32>
    %345 = vector.broadcast %344 : vector<8x1xf32> to vector<8x128xf32>
    %346 = arith.mulf %341, %345 : vector<8x128xf32>
    %c0_111 = arith.constant 0 : index
    %c0_112 = arith.constant 0 : index
    %347 = vector.load %arg9[%c0_111, %c0_112] : memref<1x128xf32, #tpu.memory_space<vmem>>, vector<1x128xf32>
    %348 = vector.broadcast %347 : vector<1x128xf32> to vector<8x128xf32>
    %349 = arith.mulf %346, %348 : vector<8x128xf32>
    %c0_113 = arith.constant 0 : index
    %c0_114 = arith.constant 0 : index
    %350 = vector.load %arg10[%c0_113, %c0_114] : memref<1x128xf32, #tpu.memory_space<vmem>>, vector<1x128xf32>
    %351 = vector.broadcast %350 : vector<1x128xf32> to vector<8x128xf32>
    %352 = arith.addf %349, %351 : vector<8x128xf32>
    %353 = arith.truncf %352 : vector<8x128xf32> to vector<8x128xbf16>
    %c0_115 = arith.constant 0 : index
    %c0_116 = arith.constant 0 : index
    %354 = vector.load %arg11[%c0_115, %c0_116] : memref<128x512xbf16, #tpu.memory_space<vmem>>, vector<128x512xbf16>
    %cst_117 = arith.constant dense<0.000000e+00> : vector<8x512xf32>
    %355 = tpu.matmul %353, %354, %cst_117 {dimension_numbers = #tpu.dot_dimension_numbers<[1], [0], [0], [1], [0, 0, 1, 1], [], []>} : vector<8x128xbf16>, vector<128x512xbf16>, vector<8x512xf32> -> vector<8x512xf32>
    %c0_118 = arith.constant 0 : index
    %c0_119 = arith.constant 0 : index
    %356 = vector.load %arg12[%c0_118, %c0_119] : memref<1x512xf32, #tpu.memory_space<vmem>>, vector<1x512xf32>
    %357 = vector.broadcast %356 : vector<1x512xf32> to vector<8x512xf32>
    %358 = arith.addf %355, %357 : vector<8x512xf32>
    %cst_120 = arith.constant 0.000000e+00 : f32
    %359 = vector.broadcast %cst_120 : f32 to vector<8x512xf32>
    %360 = arith.maximumf %358, %359 : vector<8x512xf32>
    %361 = arith.truncf %360 : vector<8x512xf32> to vector<8x512xbf16>
    %c0_121 = arith.constant 0 : index
    %c0_122 = arith.constant 0 : index
    %362 = vector.load %arg13[%c0_121, %c0_122] : memref<512x128xbf16, #tpu.memory_space<vmem>>, vector<512x128xbf16>
    %cst_123 = arith.constant dense<0.000000e+00> : vector<8x128xf32>
    %363 = tpu.matmul %361, %362, %cst_123 {dimension_numbers = #tpu.dot_dimension_numbers<[1], [0], [0], [1], [0, 0, 1, 1], [], []>} : vector<8x512xbf16>, vector<512x128xbf16>, vector<8x128xf32> -> vector<8x128xf32>
    %c0_124 = arith.constant 0 : index
    %c0_125 = arith.constant 0 : index
    %364 = vector.load %arg14[%c0_124, %c0_125] : memref<1x128xf32, #tpu.memory_space<vmem>>, vector<1x128xf32>
    %365 = vector.broadcast %364 : vector<1x128xf32> to vector<8x128xf32>
    %366 = arith.addf %363, %365 : vector<8x128xf32>
    %367 = arith.addf %352, %366 : vector<8x128xf32>
    %cst_126 = arith.constant dense<0.000000e+00> : vector<8xf32>
    %368 = vector.multi_reduction <add>, %367, %cst_126 [1] : vector<8x128xf32> to vector<8xf32>
    %369 = vector.shape_cast %368 : vector<8xf32> to vector<8x1xf32>
    %cst_127 = arith.constant 1.280000e+02 : f32
    %370 = vector.broadcast %cst_127 : f32 to vector<8x1xf32>
    %371 = arith.divf %369, %370 : vector<8x1xf32>
    %372 = vector.broadcast %371 : vector<8x1xf32> to vector<8x128xf32>
    %373 = arith.subf %367, %372 : vector<8x128xf32>
    %374 = arith.mulf %373, %373 : vector<8x128xf32>
    %cst_128 = arith.constant dense<0.000000e+00> : vector<8xf32>
    %375 = vector.multi_reduction <add>, %374, %cst_128 [1] : vector<8x128xf32> to vector<8xf32>
    %376 = vector.shape_cast %375 : vector<8xf32> to vector<8x1xf32>
    %cst_129 = arith.constant 1.280000e+02 : f32
    %377 = vector.broadcast %cst_129 : f32 to vector<8x1xf32>
    %378 = arith.divf %376, %377 : vector<8x1xf32>
    %379 = vector.broadcast %371 : vector<8x1xf32> to vector<8x128xf32>
    %380 = arith.subf %367, %379 : vector<8x128xf32>
    %cst_130 = arith.constant 9.99999974E-6 : f32
    %381 = vector.broadcast %cst_130 : f32 to vector<8x1xf32>
    %382 = arith.addf %378, %381 : vector<8x1xf32>
    %383 = math.rsqrt %382 : vector<8x1xf32>
    %384 = vector.broadcast %383 : vector<8x1xf32> to vector<8x128xf32>
    %385 = arith.mulf %380, %384 : vector<8x128xf32>
    %c0_131 = arith.constant 0 : index
    %c0_132 = arith.constant 0 : index
    %386 = vector.load %arg15[%c0_131, %c0_132] : memref<1x128xf32, #tpu.memory_space<vmem>>, vector<1x128xf32>
    %387 = vector.broadcast %386 : vector<1x128xf32> to vector<8x128xf32>
    %388 = arith.mulf %385, %387 : vector<8x128xf32>
    %c0_133 = arith.constant 0 : index
    %c0_134 = arith.constant 0 : index
    %389 = vector.load %arg16[%c0_133, %c0_134] : memref<1x128xf32, #tpu.memory_space<vmem>>, vector<1x128xf32>
    %390 = vector.broadcast %389 : vector<1x128xf32> to vector<8x128xf32>
    %391 = arith.addf %388, %390 : vector<8x128xf32>
    %392 = vector.shape_cast %391 : vector<8x128xf32> to vector<1x8x128xf32>
    %393 = arith.truncf %392 : vector<1x8x128xf32> to vector<1x8x128xbf16>
    %c0_135 = arith.constant 0 : index
    %c0_136 = arith.constant 0 : index
    %c0_137 = arith.constant 0 : index
    %394 = vector.load %arg17[%c0_135, %c0_136, %c0_137] : memref<1x8x128xbf16, #tpu.memory_space<vmem>>, vector<1x8x128xbf16>
    tpu.vector_store %arg17[%c0_135, %c0_136, %c0_137], %393 {strides = array<i32>} : memref<1x8x128xbf16, #tpu.memory_space<vmem>>, vector<1x8x128xbf16>,
    return
  }
  func.func @transform_0(%arg0: i32) -> (i32, i32, i32) {
    %c0_i32 = arith.constant 0 : i32
    %c0_i32_0 = arith.constant 0 : i32
    %c0_i32_1 = arith.constant 0 : i32
    return %arg0, %c0_i32, %c0_i32_0 : i32, i32, i32
  }
  func.func @transform_1(%arg0: i32) -> (i32, i32, i32) {
    %c0_i32 = arith.constant 0 : i32
    %c0_i32_0 = arith.constant 0 : i32
    %c0_i32_1 = arith.constant 0 : i32
    return %arg0, %c0_i32, %c0_i32_0 : i32, i32, i32
  }
  func.func @transform_2(%arg0: i32) -> (i32, i32) {
    %c0_i32 = arith.constant 0 : i32
    %c0_i32_0 = arith.constant 0 : i32
    %c0_i32_1 = arith.constant 0 : i32
    return %c0_i32, %c0_i32_0 : i32, i32
  }
  func.func @transform_3(%arg0: i32) -> (i32, i32, i32) {
    %c0_i32 = arith.constant 0 : i32
    %c0_i32_0 = arith.constant 0 : i32
    %c0_i32_1 = arith.constant 0 : i32
    %c0_i32_2 = arith.constant 0 : i32
    return %c0_i32, %c0_i32_0, %c0_i32_1 : i32, i32, i32
  }
  func.func @transform_4(%arg0: i32) -> (i32, i32) {
    %c0_i32 = arith.constant 0 : i32
    %c0_i32_0 = arith.constant 0 : i32
    %c0_i32_1 = arith.constant 0 : i32
    return %c0_i32, %c0_i32_0 : i32, i32
  }
  func.func @transform_5(%arg0: i32) -> (i32, i32) {
    %c0_i32 = arith.constant 0 : i32
    %c0_i32_0 = arith.constant 0 : i32
    %c0_i32_1 = arith.constant 0 : i32
    return %c0_i32, %c0_i32_0 : i32, i32
  }
  func.func @transform_6(%arg0: i32) -> (i32, i32) {
    %c0_i32 = arith.constant 0 : i32
    %c0_i32_0 = arith.constant 0 : i32
    %c0_i32_1 = arith.constant 0 : i32
    return %c0_i32, %c0_i32_0 : i32, i32
  }
  func.func @transform_7(%arg0: i32) -> (i32, i32) {
    %c0_i32 = arith.constant 0 : i32
    %c0_i32_0 = arith.constant 0 : i32
    %c0_i32_1 = arith.constant 0 : i32
    return %c0_i32, %c0_i32_0 : i32, i32
  }
  func.func @transform_8(%arg0: i32) -> (i32, i32) {
    %c0_i32 = arith.constant 0 : i32
    %c0_i32_0 = arith.constant 0 : i32
    %c0_i32_1 = arith.constant 0 : i32
    return %c0_i32, %c0_i32_0 : i32, i32
  }
  func.func @transform_9(%arg0: i32) -> (i32, i32) {
    %c0_i32 = arith.constant 0 : i32
    %c0_i32_0 = arith.constant 0 : i32
    %c0_i32_1 = arith.constant 0 : i32
    return %c0_i32, %c0_i32_0 : i32, i32
  }
  func.func @transform_10(%arg0: i32) -> (i32, i32) {
    %c0_i32 = arith.constant 0 : i32
    %c0_i32_0 = arith.constant 0 : i32
    %c0_i32_1 = arith.constant 0 : i32
    return %c0_i32, %c0_i32_0 : i32, i32
  }
  func.func @transform_11(%arg0: i32) -> (i32, i32) {
    %c0_i32 = arith.constant 0 : i32
    %c0_i32_0 = arith.constant 0 : i32
    %c0_i32_1 = arith.constant 0 : i32
    return %c0_i32, %c0_i32_0 : i32, i32
  }
  func.func @transform_12(%arg0: i32) -> (i32, i32) {
    %c0_i32 = arith.constant 0 : i32
    %c0_i32_0 = arith.constant 0 : i32
    %c0_i32_1 = arith.constant 0 : i32
    return %c0_i32, %c0_i32_0 : i32, i32
  }
  func.func @transform_13(%arg0: i32) -> (i32, i32) {
    %c0_i32 = arith.constant 0 : i32
    %c0_i32_0 = arith.constant 0 : i32
    %c0_i32_1 = arith.constant 0 : i32
    return %c0_i32, %c0_i32_0 : i32, i32
  }
  func.func @transform_14(%arg0: i32) -> (i32, i32) {
    %c0_i32 = arith.constant 0 : i32
    %c0_i32_0 = arith.constant 0 : i32
    %c0_i32_1 = arith.constant 0 : i32
    return %c0_i32, %c0_i32_0 : i32, i32
  }
  func.func @transform_15(%arg0: i32) -> (i32, i32) {
    %c0_i32 = arith.constant 0 : i32
    %c0_i32_0 = arith.constant 0 : i32
    %c0_i32_1 = arith.constant 0 : i32
    return %c0_i32, %c0_i32_0 : i32, i32
  }
  func.func @transform_16(%arg0: i32) -> (i32, i32, i32) {
    %c0_i32 = arith.constant 0 : i32
    %c0_i32_0 = arith.constant 0 : i32
    %c0_i32_1 = arith.constant 0 : i32
    return %arg0, %c0_i32, %c0_i32_0 : i32, i32, i32
  }
}

</mosaic_0001>

<bundles_post_ra>
// kernel: tpu_custom_call.1
= control target key start
LH: loop header
LB: loop body
LE: loop exit
PB: predicated region body
PF: predicated region fallthrough
CT: control target
= control target key end

     0   :  { %s4515_s0 = inlined_call_operand.hbm [shape: bf16[2,16,128], index: 0, kind: input, shape index: {}]   ;;  %s4516_s1 = inlined_call_operand.hbm [shape: f32[2,2,16], index: 1, kind: input, shape index: {}]   ;;  %s4517_s2 = inlined_call_operand.hbm [shape: f32[8,128], index: 2, kind: input, shape index: {}]   ;;  %s4518_s3 = inlined_call_operand.hbm [shape: bf16[8,8,16], index: 3, kind: input, shape index: {}]   ;;  %s4519_s4 = inlined_call_operand.hbm [shape: bf16[128,256], index: 4, kind: input, shape index: {}]   ;;  %s4520_s5 = inlined_call_operand.vmem [shape: f32[1,256], index: 5, kind: input, shape index: {}]   ;;  %s4521_s6 = inlined_call_operand.hbm [shape: bf16[128,128], index: 6, kind: input, shape index: {}]   ;;  %s4522_s7 = inlined_call_operand.vmem [shape: f32[1,128], index: 7, kind: input, shape index: {}]   ;;  %s4523_s8 = inlined_call_operand.vmem [shape: f32[1,128], index: 8, kind: input, shape index: {}]   ;;  %s4524_s9 = inlined_call_operand.vmem [shape: f32[1,128], index: 9, kind: input, shape index: {}]   ;;  %s4525_s10 = inlined_call_operand.hbm [shape: bf16[128,512], index: 10, kind: input, shape index: {}]   ;;  %s4526_s11 = inlined_call_operand.vmem [shape: f32[1,512], index: 11, kind: input, shape index: {}]   ;;  %s4527_s12 = inlined_call_operand.hbm [shape: bf16[512,128], index: 12, kind: input, shape index: {}]   ;;  %s4528_s13 = inlined_call_operand.vmem [shape: f32[1,128], index: 13, kind: input, shape index: {}]   ;;  %s4529_s14 = inlined_call_operand.vmem [shape: f32[1,128], index: 14, kind: input, shape index: {}]   ;;  %s4530_s15 = inlined_call_operand.vmem [shape: f32[1,128], index: 15, kind: input, shape index: {}]   ;;  %s4531_s16 = inlined_call_operand.hbm [shape: bf16[2,8,128], index: 16, kind: output, shape index: {}]  }
   0x1   :  { %4544 = sst [smem:[#allocation26_spill]] %s4515_s0 }
   0x2   :  { %4545 = sst [smem:[#allocation27_spill]] %s4517_s2 }
   0x3   :  { %4546 = sst [smem:[#allocation28_spill]] %s4518_s3 }
   0x4   :  { %4547 = sst [smem:[#allocation29_spill]] %s4519_s4 }
   0x5   :  { %4548 = sst [smem:[#allocation30_spill]] %s4521_s6 }
   0x6   :  { %4549 = sst [smem:[#allocation31_spill]] %s4525_s10 }
   0x7   :  { %4550 = sst [smem:[#allocation32_spill]] %s4526_s11 }
   0x8   :  { %4551 = sst [smem:[#allocation33_spill]] %s4527_s12 }
   0x9   :  { %4552 = sst [smem:[#allocation34_spill]] %s4528_s13 }
   0xa   :  { %4553 = sst [smem:[#allocation35_spill]] %s4529_s14 }
   0xb   :  { %4554 = sst [smem:[#allocation36_spill]] %s4530_s15 }
   0xc   :  { %4555 = sst [smem:[#allocation37_spill]] %s4531_s16 }
   0xd   :  { %21 = vsyncpa [#allocation3], 0 }
   0xe   :  { %23 = vsyncpa [#allocation3 + $0x1], 0 }
   0xf   :  { %24 = vsyncpa [#allocation6], 0 }
  0x10   :  { %26 = vsyncpa [#allocation6 + $0x1], 0 }
  0x11   :  { %27 = vsyncpa [#allocation9], 0 }
  0x12   :  { %28 = vsyncpa [#allocation12], 0 }
  0x13   :  { %29 = vsyncpa [#allocation15], 0 }
  0x14   :  { %30 = vsyncpa [#allocation4], 0 }
  0x15   :  { %32 = vsyncpa [#allocation4 + $0x1], 0  ;;  %s3884_s21 = smov 0   ;;  %s3886_s22 = smov 0  }
  0x16   :  { %s3888_s23 = smov 0   ;;  %s3890_s24 = smov 0  }
  0x17 LB: > { %4556 = sst [smem:[#allocation24_spill]] %s3768_s23  ;;  %s3774_s25 = smov [#allocation7]   ;;  %s3772_s24 = sphi %s3890_s24, %s4601_s24   ;;  %s3768_s23 = sphi %s3888_s23, %s4598_s23   ;;  %s3764_s22 = sphi %s3886_s22, %s4600_s22   ;;  %s3760_s21 = sphi %s3884_s21, %s4599_s21  }
  0x18   : > { %s428_s26 = sshll.u32 %s3774_s25, 4  ;;  %s3905_s27 = sadd.s32 4294967295, %s3772_s24   ;;  %s429_s26 = int_to_ptr.vmem [resolvable:$true] %s428_s26 }
  0x19   : > { %p2823_p0 = scmp.ge.s32.totalorder %s3772_s24, 1  ;;  %p4534_p1 = scmp.eq.s32.totalorder %s3905_s27, 0 }
  0x1a   : > { %p415_p2 = scmp.lt.s32.totalorder %s3772_s24, 3  ;;  %s3775_s29 = smov [#allocation8]  }
  0x1b   : > { %s438_s30 = sshll.u32 %s3775_s29, 4  ;;  %s3776_s17 = smov [#allocation11]   ;;  %s3917_s30 = int_to_ptr.vmem [resolvable:$true] %s438_s30 }
  0x1c   : > { %p3910_p3 = pnand %p2823_p0, %p415_p2  ;;  %s467_s18 = sshll.u32 %s3776_s17, 4  ;;  %s3925_s18 = int_to_ptr.vmem [resolvable:$true] %s467_s18 }
  0x1d   : > { %s4559_s2 = sld [smem:[#allocation27_spill]] }
  0x1e   : > { %s4557_s28 = scalar_select %p3910_p3, 1, 0 }
  0x1f   : > { %p3193_p5 = pneg %p3910_p3 }
  0x21   : > { %p3921_p6 = pnand %p3193_p5, %p4534_p1 }
  0x23   : > { %s3458_s25 = scalar_lea.hbm %s4559_s2, 128  ;;  %p3935_p8 = pneg %p3921_p6 }
  0x24   : > { %p3459_p7 = scmp.ne.s32.totalorder %s4559_s2, %s3458_s25  ;;  %p3465_p11 = scmp.lt.u32.totalorder %s3458_s25, %s4559_s2 }
  0x26   : > { %p3461_p9 = pnand %p3935_p8, %p3459_p7 }
  0x28   : > { %p3462_p10 = pneg %p3461_p9 }
  0x2a   : > { %p3467_p12 = pnand %p3465_p11, %p3462_p10 }
  0x2c   : > { %3470 = shalt.err (!%p3467_p12)
}
  0x2d   : > { %s3471_s19 = scalar_lea.vmem %s429_s26, 128  ;;  %p3479_p5 = scmp.lt.s32.totalorder %s429_s26, %s429_s26 }
  0x2e   : > { %p3472_p13 = scmp.ne.s32.totalorder %s429_s26, %s3471_s19  ;;  %p3480_p4 = scmp.lt.s32.totalorder %s3471_s19, %s3471_s19 }
  0x30   : > { %p3474_p0 = pnand %p3472_p13, %p3935_p8  ;;  %p3481_p1 = por %p3480_p4, %p3479_p5 }
  0x32   : > { %p3475_p2 = pneg %p3474_p0 }
  0x34   : > { %p3482_p3 = pnand %p3481_p1, %p3475_p2 }
  0x36   : > { %3485 = shalt.err (!%p3482_p3)
}
  0x37   : > { %3196 = dma.hbm_to_vmem [thread:$0]  (!%p3921_p6), %s4559_s2, 128, %s429_s26, [#allocation6]  }
  0x38   : > { %s4561_s3 = sld [smem:[#allocation28_spill]] }
  0x3e   : > { %s3486_s25 = scalar_lea.hbm %s4561_s3, 512 }
  0x3f   : > { %p3487_p7 = scmp.ne.s32.totalorder %s4561_s3, %s3486_s25  ;;  %p3493_p1 = scmp.lt.u32.totalorder %s3486_s25, %s4561_s3 }
  0x41   : > { %p3489_p9 = pnand %p3487_p7, %p3935_p8 }
  0x43   : > { %p3490_p4 = pneg %p3489_p9 }
  0x45   : > { %p3495_p3 = pnand %p3493_p1, %p3490_p4 }
  0x47   : > { %3498 = shalt.err (!%p3495_p3)
}
  0x48   : > { %s3499_s26 = scalar_lea.vmem %s3917_s30, 512  ;;  %p3507_p13 = scmp.lt.s32.totalorder %s3917_s30, %s3917_s30 }
  0x49   : > { %p3500_p10 = scmp.ne.s32.totalorder %s3917_s30, %s3499_s26  ;;  %p3508_p0 = scmp.lt.s32.totalorder %s3499_s26, %s3499_s26 }
  0x4b   : > { %p3502_p11 = pnand %p3500_p10, %p3935_p8  ;;  %p3509_p2 = por %p3508_p0, %p3507_p13 }
  0x4d   : > { %p3503_p12 = pneg %p3502_p11 }
  0x4f   : > { %p3510_p5 = pnand %p3509_p2, %p3503_p12 }
  0x51   : > { %3513 = shalt.err (!%p3510_p5)
}
  0x52   : > { %s4536_s13 = smov 64   ;;  %s4538_s11 = smov 4  }
  0x53   : > { %3199 = dma.hbm_to_vmem [thread:$0]  (!%p3921_p6), %s4561_s3, 512, %s3917_s30, [#allocation9], %s4536_s13, %s4536_s13, %s4538_s11  }
  0x54   : > { %s4562_s6 = sld [smem:[#allocation30_spill]] }
  0x5a   : > { %s3514_s25 = scalar_lea.hbm %s4562_s6, 1024 }
  0x5b   : > { %p3515_p7 = scmp.ne.s32.totalorder %s4562_s6, %s3514_s25  ;;  %p3521_p1 = scmp.lt.u32.totalorder %s3514_s25, %s4562_s6 }
  0x5d   : > { %p3517_p9 = pnand %p3515_p7, %p3935_p8 }
  0x5f   : > { %p3518_p4 = pneg %p3517_p9 }
  0x61   : > { %p3523_p3 = pnand %p3521_p1, %p3518_p4 }
  0x63   : > { %3526 = shalt.err (!%p3523_p3)
}
  0x64   : > { %s3527_s30 = scalar_lea.vmem %s3925_s18, 1024  ;;  %p3535_p13 = scmp.lt.s32.totalorder %s3925_s18, %s3925_s18 }
  0x65   : > { %p3528_p10 = scmp.ne.s32.totalorder %s3925_s18, %s3527_s30  ;;  %p3536_p0 = scmp.lt.s32.totalorder %s3527_s30, %s3527_s30 }
  0x67   : > { %p3530_p11 = pnand %p3528_p10, %p3935_p8  ;;  %p3537_p2 = por %p3536_p0, %p3535_p13 }
  0x69   : > { %p3531_p12 = pneg %p3530_p11 }
  0x6b   : > { %p3538_p5 = pnand %p3537_p2, %p3531_p12 }
  0x6d   : > { %3541 = shalt.err (!%p3538_p5)
}
  0x6e   : > { %3205 = dma.hbm_to_vmem [thread:$0]  (!%p3921_p6), %s4562_s6, 1024, %s3925_s18, [#allocation12], %s4536_s13, %s4536_s13, %s4538_s11  }
  0x6f   : > { %s3779_s16 = smov [#allocation10]   ;;  %s4563_s4 = sld [smem:[#allocation29_spill]] }
  0x70   : > { %s451_s14 = sshll.u32 %s3779_s16, 4  ;;  %s452_s14 = int_to_ptr.vmem [resolvable:$true] %s451_s14 }
  0x75   : > { %s3542_s17 = scalar_lea.hbm %s4563_s4, 2048 }
  0x76   : > { %p3543_p7 = scmp.ne.s32.totalorder %s4563_s4, %s3542_s17  ;;  %p3549_p1 = scmp.lt.u32.totalorder %s3542_s17, %s4563_s4 }
  0x78   : > { %p3545_p9 = pnand %p3543_p7, %p3935_p8 }
  0x7a   : > { %p3546_p4 = pneg %p3545_p9 }
  0x7c   : > { %p3551_p3 = pnand %p3549_p1, %p3546_p4 }
  0x7e   : > { %3554 = shalt.err (!%p3551_p3)
}
  0x7f   : > { %s3555_s18 = scalar_lea.vmem %s452_s14, 2048  ;;  %p3563_p13 = scmp.lt.s32.totalorder %s452_s14, %s452_s14 }
  0x80   : > { %p3556_p10 = scmp.ne.s32.totalorder %s452_s14, %s3555_s18  ;;  %p3564_p0 = scmp.lt.s32.totalorder %s3555_s18, %s3555_s18 }
  0x82   : > { %p3558_p11 = pnand %p3556_p10, %p3935_p8  ;;  %p3565_p2 = por %p3564_p0, %p3563_p13 }
  0x84   : > { %p3559_p12 = pneg %p3558_p11 }
  0x86   : > { %p3566_p5 = pnand %p3565_p2, %p3559_p12 }
  0x88   : > { %3569 = shalt.err (!%p3566_p5)
}
  0x89   : > { %s3780_s2 = smov 128   ;;  %s3781_s15 = smov 8  }
  0x8a   : > { %3202 = dma.hbm_to_vmem [thread:$0]  (!%p3921_p6), %s4563_s4, 2048, %s452_s14, [#allocation9], %s3780_s2, %s3780_s2, %s3781_s15  }
  0x8b   : > { %s3782_s20 = smov [#allocation13]   ;;  %s4564_s10 = sld [smem:[#allocation31_spill]] }
  0x8c   : > { %s489_s25 = sshll.u32 %s3782_s20, 4  ;;  %s490_s25 = int_to_ptr.vmem [resolvable:$true] %s489_s25 }
  0x91   : > { %s3570_s26 = scalar_lea.hbm %s4564_s10, 4096 }
  0x92   : > { %p3571_p7 = scmp.ne.s32.totalorder %s4564_s10, %s3570_s26  ;;  %p3577_p1 = scmp.lt.u32.totalorder %s3570_s26, %s4564_s10 }
  0x94   : > { %p3573_p9 = pnand %p3571_p7, %p3935_p8 }
  0x96   : > { %p3574_p4 = pneg %p3573_p9 }
  0x98   : > { %p3579_p3 = pnand %p3577_p1, %p3574_p4 }
  0x9a   : > { %3582 = shalt.err (!%p3579_p3)
}
  0x9b   : > { %s3583_s14 = scalar_lea.vmem %s490_s25, 4096  ;;  %p3591_p13 = scmp.lt.s32.totalorder %s490_s25, %s490_s25 }
  0x9c   : > { %p3584_p10 = scmp.ne.s32.totalorder %s490_s25, %s3583_s14  ;;  %p3592_p0 = scmp.lt.s32.totalorder %s3583_s14, %s3583_s14 }
  0x9e   : > { %p3586_p11 = pnand %p3584_p10, %p3935_p8  ;;  %p3593_p2 = por %p3592_p0, %p3591_p13 }
  0xa0   : > { %p3587_p12 = pneg %p3586_p11 }
  0xa2   : > { %p3594_p5 = pnand %p3593_p2, %p3587_p12 }
  0xa4   : > { %3597 = shalt.err (!%p3594_p5)
}
  0xa5   : > { %s3783_s2 = smov 256   ;;  %s3784_s15 = smov 16  }
  0xa6   : > { %3208 = dma.hbm_to_vmem [thread:$0]  (!%p3921_p6), %s4564_s10, 4096, %s490_s25, [#allocation12], %s3783_s2, %s3783_s2, %s3784_s15  }
  0xa7   : > { %s3785_s3 = smov [#allocation14]   ;;  %s4565_s12 = sld [smem:[#allocation33_spill]] }
  0xa8   : > { %s505_s16 = sshll.u32 %s3785_s3, 4  ;;  %s506_s16 = int_to_ptr.vmem [resolvable:$true] %s505_s16 }
  0xad   : > { %s3598_s19 = scalar_lea.hbm %s4565_s12, 4096 }
  0xae   : > { %p3599_p7 = scmp.ne.s32.totalorder %s4565_s12, %s3598_s19  ;;  %p3605_p1 = scmp.lt.u32.totalorder %s3598_s19, %s4565_s12 }
  0xb0   : > { %p3601_p9 = pnand %p3599_p7, %p3935_p8 }
  0xb2   : > { %p3602_p4 = pneg %p3601_p9 }
  0xb4   : > { %p3607_p3 = pnand %p3605_p1, %p3602_p4 }
  0xb6   : > { %3610 = shalt.err (!%p3607_p3)
}
  0xb7   : > { %s3611_s25 = scalar_lea.vmem %s506_s16, 4096  ;;  %p3619_p13 = scmp.lt.s32.totalorder %s506_s16, %s506_s16 }
  0xb8   : > { %p3612_p10 = scmp.ne.s32.totalorder %s506_s16, %s3611_s25  ;;  %p3620_p0 = scmp.lt.s32.totalorder %s3611_s25, %s3611_s25 }
  0xba   : > { %p3614_p11 = pnand %p3612_p10, %p3935_p8  ;;  %p3621_p2 = por %p3620_p0, %p3619_p13 }
  0xbc   : > { %p3615_p12 = pneg %p3614_p11 }
  0xbe   : > { %p3622_p5 = pnand %p3621_p2, %p3615_p12 }
  0xc0   : > { %3625 = shalt.err (!%p3622_p5)
}
  0xc1   : > { %s4566_s2 = smov 4   ;;  %s4567_s15 = smov 64  }
  0xc2   : > { %3211 = dma.hbm_to_vmem [thread:$0]  (!%p3921_p6), %s4565_s12, 4096, %s506_s16, [#allocation15], %s4567_s15, %s4567_s15, %s4566_s2  }
  0xc3   : > { %s2822_s0 = sadd.s32 4294967294, %s3772_s24   ;;  %s4062_s29 = sadd.s32 1, %s3772_s24  }
  0xc4   : > { %s42_s3 = ssub.s32 %s3772_s24, %s4062_s29  ;;  %s45_s20 = sadd.s32 1, %s3768_s23 }
  0xc5   : > { %p43_p8 = scmp.eq.s32.totalorder %s42_s3, 0  ;;  %p52_p7 = scmp.ne.s32.totalorder %s3768_s23, %s3764_s22 }
  0xc6   : > { %p53_p9 = scmp.eq.s32.totalorder %s3772_s24, 0  ;;  %p58_p4 = scmp.ne.s32.totalorder %s3764_s22, %s3760_s21 }
  0xc7   : > { %s4073_s17 = scalar_select %p43_p8, %s3768_s23, %s45_s20  }
  0xc8   : > { %p4075_p1 = por %p53_p9, %p52_p7  ;;  %p4570_p3 = scmp.eq.s32.totalorder %s3905_s27, 0 }
  0xc9   : > { %4568 = sst [smem:[#allocation25_spill]] %s4073_s17  ;;  %p402_p10 = scmp.eq.s32.totalorder %s3905_s27, 1 }
  0xca   : > { %p4081_p6 = por %p4570_p3, %p58_p4  ;;  %p408_p11 = scmp.eq.s32.totalorder %s2822_s0, 1 }
  0xcb   : > { %p3229_p12 = scmp.lt.s32.totalorder %s3772_s24, 2  ;;  %s4088_s26 = sand.u32 1, %s3768_s23  }
  0xcc   : > { %s4571_s16 = scalar_select %p4081_p6, 1, 0 }
  0xcd   : > { %p4090_p13 = por %p402_p10, %p52_p7  ;;  %p4094_p0 = por %p408_p11, %p58_p4 }
  0xce   : > { %s2831_s14 = sshll.u32 %s4088_s26, 3  ;;  %s2961_s25 = sshll.u32 %s3772_s24, 7 }
  0xcf   : > { %s4572_s30 = scalar_select %p4090_p13, 1, 0 }
  0xd0   : > { %s4573_s18 = scalar_select %p4094_p0, 1, 0 }
  0xd1   : > { %s4574_s3 = sld [smem:[#allocation26_spill]]  ;;  %s532_s20 = scalar_lea.vmem [#allocation2], %s2831_s14 }
  0xd2   : > { %s539_s4 = sshll.u32 %s532_s20, 4  ;;  %p4109_p2 = pnand %p3229_p12, %p4075_p1  ;;  %s4105_s4 = int_to_ptr.vmem [resolvable:$true] %s539_s4 }
  0xd3   : > { %s2834_s12 = sshll.u32 %s4088_s26, 1  ;;  %s529_s13 = scalar_lea.sflag [#allocation3], %s4088_s26 }
  0xd4   : > { %p3628_p8 = pneg %p4109_p2 }
  0xd7   : > { %s4103_s0 = scalar_lea.hbm %s4574_s3, %s2961_s25  ;;  %s3631_s19 = scalar_lea.hbm %s4574_s3, 256 }
  0xd8   : > { %s3626_s25 = scalar_lea.hbm %s4103_s0, 128  ;;  %p3632_p4 = scmp.lt.u32.totalorder %s4103_s0, %s4574_s3 }
  0xd9   : > { %p3627_p5 = scmp.ne.s32.totalorder %s4103_s0, %s3626_s25  ;;  %p3633_p1 = scmp.lt.u32.totalorder %s3631_s19, %s3626_s25 }
  0xda   : > { %p3635_p10 = scmp.lt.u32.totalorder %s3626_s25, %s4103_s0 }
  0xdb   : > { %p3629_p7 = pnand %p3628_p8, %p3627_p5  ;;  %p3634_p3 = por %p3633_p1, %p3632_p4 }
  0xdd   : > { %p3630_p9 = pneg %p3629_p7  ;;  %p3636_p11 = por %p3635_p10, %p3634_p3 }
  0xdf   : > { %p3637_p12 = pnand %p3636_p11, %p3630_p9 }
  0xe1   : > { %3640 = shalt.err (!%p3637_p12)
}
  0xe2   : > { %s3641_s10 = scalar_lea.vmem %s4105_s4, 128  ;;  %s3786_s14 = smov [#allocation2]  }
  0xe3   : > { %p3642_p5 = scmp.ne.s32.totalorder %s4105_s4, %s3641_s10  ;;  %s3646_s11 = sshll.u32 %s3786_s14, 4  ;;  %s3647_s11 = int_to_ptr.vmem [resolvable:$false] %s3646_s11 }
  0xe4   : > { %s3648_s17 = scalar_lea.vmem %s3647_s11, 256  ;;  %p3649_p13 = scmp.lt.s32.totalorder %s4105_s4, %s3647_s11 }
  0xe5   : > { %p3644_p7 = pnand %p3642_p5, %p3628_p8  ;;  %p3650_p4 = scmp.lt.s32.totalorder %s3648_s17, %s3641_s10 }
  0xe7   : > { %p3645_p0 = pneg %p3644_p7  ;;  %p3651_p1 = por %p3650_p4, %p3649_p13 }
  0xe9   : > { %p3652_p3 = pnand %p3651_p1, %p3645_p0 }
  0xeb   : > { %3655 = shalt.err (!%p3652_p3)
}
  0xec   : > { %3215 = dma.hbm_to_vmem [thread:$0]  (!%p4109_p2), %s4103_s0, 128, %s4105_s4, %s529_s13, %s4567_s15, %s4567_s15, %s4566_s2  }
  0xed   : > { %s2835_s25 = sshll.u32 %s3772_s24, 5  ;;  %s553_s14 = scalar_lea.vmem [#allocation5], %s2834_s12 }
  0xee   : > { %s4150_s20 = scalar_lea.hbm %s4516_s1, %s2835_s25  ;;  %s560_s11 = sshll.u32 %s553_s14, 4  ;;  %s561_s11 = int_to_ptr.vmem [resolvable:$true] %s560_s11 }
  0xef   : > { %s4576_s17 = sand.u32 1, %s3772_s24   ;;  %s3656_s23 = scalar_lea.hbm %s4150_s20, 32 }
  0xf0   : > { %s550_s3 = scalar_lea.sflag [#allocation6], %s4576_s17  ;;  %p3657_p13 = scmp.ne.s32.totalorder %s4150_s20, %s3656_s23 }
  0xf1   : > { %s3661_s15 = scalar_lea.hbm %s4516_s1, 64  ;;  %p3662_p10 = scmp.lt.u32.totalorder %s4150_s20, %s4516_s1 }
  0xf2   : > { %p3659_p0 = pnand %p3657_p13, %p3628_p8  ;;  %p3663_p11 = scmp.lt.u32.totalorder %s3661_s15, %s3656_s23 }
  0xf3   : > { %p3665_p5 = scmp.lt.u32.totalorder %s3656_s23, %s4150_s20 }
  0xf4   : > { %p3660_p9 = pneg %p3659_p0  ;;  %p3664_p12 = por %p3663_p11, %p3662_p10 }
  0xf6   : > { %p3666_p7 = por %p3665_p5, %p3664_p12 }
  0xf8   : > { %p3667_p4 = pnand %p3666_p7, %p3660_p9 }
  0xfa   : > { %3670 = shalt.err (!%p3667_p4)
}
  0xfb   : > { %s3671_s12 = scalar_lea.vmem %s561_s11, 32  ;;  %s3787_s13 = smov [#allocation5]  }
  0xfc   : > { %p3672_p1 = scmp.ne.s32.totalorder %s561_s11, %s3671_s12  ;;  %s3676_s25 = sshll.u32 %s3787_s13, 4  ;;  %s3677_s25 = int_to_ptr.vmem [resolvable:$false] %s3676_s25 }
  0xfd   : > { %s3678_s19 = scalar_lea.vmem %s3677_s25, 64  ;;  %p3679_p0 = scmp.lt.s32.totalorder %s561_s11, %s3677_s25 }
  0xfe   : > { %p3674_p3 = pnand %p3672_p1, %p3628_p8  ;;  %p3680_p6 = scmp.lt.s32.totalorder %s3678_s19, %s3671_s12 }
 0x100   : > { %p3675_p13 = pneg %p3674_p3  ;;  %p3681_p10 = por %p3680_p6, %p3679_p0 }
 0x102   : > { %p3682_p11 = pnand %p3681_p10, %p3675_p13 }
 0x104   : > { %3685 = shalt.err (!%p3682_p11)
}
 0x105   : > { %3218 = dma.hbm_to_vmem [thread:$0]  (!%p4109_p2), %s4150_s20, 32, %s561_s11, %s550_s3  }
 0x106   : > { %p4577_p9 = scmp.ne.s32.totalorder %s4557_s28, 0 }
 0x107   : > { %s4178_s23 = sand.u32 (!%p4577_p9), 1, %s3764_s22   ;;  %p4578_p6 = scmp.ne.s32.totalorder (!%p4577_p9), %s4571_s16, 0 }
 0x108   : > { %569 = sbr.rel (%p4577_p9) target bundleno = 5009 (0x1391), region = 84  ;;  %s2837_s10 = sshll.u32 (!%p4577_p9), %s4178_s23, 3 }
 0x109   : > { %s572_s14 = scalar_lea.sflag (!%p4577_p9), [#allocation3], %s4178_s23  ;;  %s4182_s17 = scalar_lea.vmem (!%p4577_p9), [#allocation2], %s2837_s10 }
 0x10f   : > { %3731 = dma.done.wait (%p4578_p6), %s572_s14, 128  }
 0x110   : > { %3733 = vsyncadd (%p4578_p6), %s572_s14, 4294967168  ;;  %s580_s6 = sand.u32 1, %s3905_s27   ;;  %s2838_s28 = sshll.u32 %s4178_s23, 1 }
 0x111   : > { %s581_s3 = scalar_lea.sflag [#allocation6], %s580_s6  ;;  %s4190_s20 = scalar_lea.vmem [#allocation5], %s2838_s28 }
 0x112   : > { %3735 = dma.done.wait (%p4578_p6), %s581_s3, 32  }
 0x113   : > { %3737 = vsyncadd (%p4578_p6), %s581_s3, 4294967264  ;;  %p4579_p2 = scmp.eq.s32.totalorder %s3905_s27, 0 }
 0x115   : > { %3739 = dma.done.wait (%p4579_p2), [#allocation6], 128   ;;  %p4580_p8 = pmov %p4579_p2 }
 0x116   : > { %p4581_p12 = pmov %p4579_p2 }
 0x117   : > { %3741 = vsyncadd (%p4580_p8), [#allocation6], 4294967168 }
 0x118   : > { %3743 = dma.done.wait (%p4581_p12), [#allocation9], 2560   ;;  %p4582_p5 = pmov %p4579_p2 }
 0x119   : > { %p4583_p7 = pmov %p4579_p2 }
 0x11a   : > { %3745 = vsyncadd (%p4582_p5), [#allocation9], 4294964736 }
 0x11b   : > { %3747 = dma.done.wait (%p4583_p7), [#allocation12], 5120   ;;  %p4584_p4 = pmov %p4579_p2 }
 0x11c   : > { %p4585_p1 = pmov %p4579_p2 }
 0x11d   : > { %3749 = vsyncadd (%p4584_p4), [#allocation12], 4294962176 }
 0x11e   : > { %3751 = dma.done.wait (%p4585_p1), [#allocation15], 4096   ;;  %p4586_p3 = pmov %p4585_p1 }
 0x11f   : > { %v3788_v0 = vmov 0   ;;  %v3291_v1 = vld [vmem:[#allocation10 + $0x4] ss:$8 sps:$4 sm:$0xff]   ;;  %v3293_v2 = vld [vmem:[#allocation10] ss:$8 sps:$4 sm:$0xff]   ;;  %v3789_v18 = vmov 0.0   ;;  %v683_v19 = vlaneseq }
 0x120   : > { %3753 = vsyncadd (%p4586_p3), [#allocation15], 4294963200  ;;  %811 = vmatprep.mubr.bf16.mxu0 %v3788_v0  ;;  %779 = vmatprep.subr.bf16.mxu0 %v3291_v1  ;;  %v3294_v3 = vld [vmem:[#allocation10 + $0x14] ss:$8 sps:$4 sm:$0xff]   ;;  %v3296_v4 = vld [vmem:[#allocation10 + $0x10] ss:$8 sps:$4 sm:$0xff]  }
 0x121   : > { %780 = vmatpush1.bf16.msra.mxu0 %v3293_v2  ;;  %v3297_v5 = vld [vmem:[#allocation10 + $0x24] ss:$8 sps:$4 sm:$0xff]   ;;  %v3299_v6 = vld [vmem:[#allocation10 + $0x20] ss:$8 sps:$4 sm:$0xff]   ;;  %v3300_v7 = vld [vmem:[#allocation10 + $0x34] ss:$8 sps:$4 sm:$0xff]   ;;  %3047 = vmatprep.subr.bf16.mxu1 %v3789_v18 }
 0x122   : > { %781 = vmatprep.subr.bf16.mxu0 %v3294_v3  ;;  %v3302_v8 = vld [vmem:[#allocation10 + $0x30] ss:$8 sps:$4 sm:$0xff]   ;;  %v3303_v9 = vld [vmem:[#allocation10 + $0x44] ss:$8 sps:$4 sm:$0xff]   ;;  %v3305_v10 = vld [vmem:[#allocation10 + $0x40] ss:$8 sps:$4 sm:$0xff]  }
 0x123   : > { %v3306_v11 = vld [vmem:[#allocation10 + $0x54] ss:$8 sps:$4 sm:$0xff]   ;;  %v3308_v12 = vld [vmem:[#allocation10 + $0x50] ss:$8 sps:$4 sm:$0xff]   ;;  %v3309_v13 = vld [vmem:[#allocation10 + $0x64] ss:$8 sps:$4 sm:$0xff]  }
 0x124   : > { %v3311_v14 = vld [vmem:[#allocation10 + $0x60] ss:$8 sps:$4 sm:$0xff]   ;;  %v3312_v15 = vld [vmem:[#allocation10 + $0x74] ss:$8 sps:$4 sm:$0xff]   ;;  %v3314_v16 = vld [vmem:[#allocation10 + $0x70] ss:$8 sps:$4 sm:$0xff]  }
 0x125   : > { %782 = vmatpush1.bf16.msra.mxu0 %v3296_v4  ;;  %v3315_v17 = vld [vmem:[%s4182_s17] sm:$0xff]   ;;  %vm3790_vm0 = vmmov 0   ;;  %v4220_v20 = vshrl.u32 %v683_v19, 7  ;;  %vm844_vm1 = vcmask 130048   ;;  %v836_v37 = vld [vmem:[#allocation8] sm:$0xf] }
 0x126   : > { %783 = vmatprep.subr.bf16.mxu0 %v3297_v5  ;;  %3049 = vmatprep.mubr.msk.bf16.mxu1 %vm3790_vm0, %v3789_v18  ;;  %v681_v22 = vld [vmem:[%s4520_s5] sm:$0x3]  ;;  %v825_v38 = vld [vmem:[%s4190_s20 + $0x1] sm:$0x1]  ;;  %v824_v43 = vld [vmem:[%s4190_s20] sm:$0x1] }
 0x127   : > { %v4223_v21 = vsub.s32 0, %v4220_v20  ;;  %v689_v23 = vsub.s32 1, %v4220_v20  ;;  %vm826_vm2 = vcmp.gt.f32.partialorder %v825_v38, 0.5  ;;  %vm828_vm4 = vcmask 122880   ;;  %s3791_s4 = smov 112   ;;  %s3792_s2 = smov 96  }
 0x128   : > { %v892_v39 = vsel %vm826_vm2, 1, %v3788_v0  ;;  %v827_v49 = vsel %vm826_vm2, %v824_v43, 0.0  ;;  %s3793_s15 = smov 80   ;;  %s3794_s26 = smov 64   ;;  %vm1820_vm5 = vcmask 261120   ;;  %vm1823_vm6 = vcmask 392192  }
 0x129   : > { %784 = vmatpush1.bf16.msra.mxu0 %v3299_v6  ;;  %v686_v24 = vrot.slane %v681_v22, %v4223_v21  ;;  %v690_v26 = vrot.slane %v681_v22, %v689_v23  ;;  %v896_v40 = vrot.slane %v892_v39, %v4223_v21  ;;  %v829_v51 = vsel %vm828_vm4, %v827_v49, 0.0  ;;  %s3795_s0 = smov 32   ;;  %s3796_s12 = smov 48  }
 0x12a   : > { %785 = vmatprep.subr.bf16.mxu0 %v3300_v7  ;;  %s3797_s13 = smov 16   ;;  %vm1826_vm7 = vcmask 523264   ;;  %vm1829_vm8 = vcmask 654336   ;;  %vm1832_vm9 = vcmask 785408   ;;  %vm1835_vm10 = vcmask 916480   ;;  %s4589_s20 = sld [smem:[#allocation32_spill]] }
 0x12b   : > { %vm4247_vm3 = vcmp.eq.s32.totalorder %v896_v40, 1  ;;  %s4592_s25 = sld [smem:[#allocation36_spill]]  ;;  %s2958_s19 = sshll.u32 %s3905_s27, 6 }
 0x12c   : > { %s4593_s28 = sld [smem:[#allocation37_spill]]  ;;  %p4594_p0 = scmp.ne.s32.totalorder %s4572_s30, 0 }
 0x12d   : > { %786 = vmatpush1.bf16.msra.mxu0 %v3302_v8  ;;  %s3798_s27 = smov [#allocation16]  }
 0x12e   : > { %787 = vmatprep.subr.bf16.mxu0 %v3303_v9  ;;  %s3690_s11 = sshll.u32 %s3798_s27, 4  ;;  %s3691_s11 = int_to_ptr.vmem [resolvable:$false] %s3690_s11 }
 0x131   : > { %788 = vmatpush1.bf16.msra.mxu0 %v3305_v10 }
 0x132   : > { %789 = vmatprep.subr.bf16.mxu0 %v3306_v11  ;;  %s4471_s3 = scalar_lea.hbm %s4593_s28, %s2958_s19 }
 0x135   : > { %790 = vmatpush1.bf16.msra.mxu0 %v3308_v12 }
 0x136   : > { %791 = vmatprep.subr.bf16.mxu0 %v3309_v13  ;;  %v837_v13 = vld [vmem:[#allocation8 + $0x4] sm:$0xf] }
 0x139   : > { %792 = vmatpush1.bf16.msra.mxu0 %v3311_v14 }
 0x13a   : > { %793 = vmatprep.subr.bf16.mxu0 %v3312_v15 }
 0x13d   : > { %794 = vmatpush1.bf16.msra.mxu0 %v3314_v16 }
 0x13e   : > { %3095 = vmatprep.subr.bf16.mxu0 %v3789_v18 }
 0x140   : > { %812 = vmatmul.mubr.bf16.vlgmr.msra.gmra.mrb[0].mxu0 %v3315_v17 }
 0x141   : > { %3097 = vmatprep.mubr.msk.bf16.mxu0 %vm3790_vm0, %v3789_v18 }
 0x213   : > { %v813_v25 = vpop.f32.mrb[0].mxu0 }
 0x214   : > { %v815_v27 = vpop.f32.mrb[1].mxu0  ;;  %v814_v29 = vadd.f32 %v813_v25, %v686_v24 }
 0x215   : > { %v817_v28 = vpop.f32.mrb[2].mxu0  ;;  %v816_v32 = vadd.f32 %v815_v27, %v690_v26 }
 0x216   : > { %v818_v30 = vadd.f32 %v817_v28, %v686_v24  ;;  %v819_v31 = vpop.f32.mrb[3].mxu0 }
 0x217   : > { %v820_v33 = vadd.f32 %v819_v31, %v690_v26 }
 0x218   : > { %v4232_v34 = vpack.c.bf16 %v818_v30, %v814_v29 }
 0x219   : > { %v4234_v35 = vpack.c.bf16 %v820_v33, %v816_v32 }
 0x21a   : > { %v849_v36 = vsel %vm844_vm1, %v4232_v34, 0 }
 0x21b   : > { %3048 = vmatpush3.bf16.xpose.msra.mxu1 %v849_v36 }
 0x21c   : > { %3053 = vmatprep.subr.bf16.mxu1 %v3789_v18 }
 0x222   : > { %3050 = vmatmul.mubr.msk.bf16.vlgmr.msra.gmra.mrb[0].mxu1 %vm844_vm1, %v836_v37 }
 0x223   : > { %3054 = vmatpush3.bf16.msra.mxu1 %v4234_v35  ;;  %3055 = vmatprep.mubr.msk.bf16.mxu1 %vm3790_vm0, %v3789_v18 }
 0x224   : > { %3059 = vmatprep.subr.bf16.mxu1 %v3789_v18 }
 0x2f5   : > { %v885_v42 = vpop.f32.mrb[0].mxu1 }
 0x2f6   : > { %v891_v44 = vmul.f32 0.25, %v885_v42  ;;  %v3051_v45 = vpop.f32.mrb[1].mxu1 }
 0x2f7   : > { %v888_v46 = vpop.f32.mrb[2].mxu1 }
 0x2f8   : > { %v3052_v47 = vpop.f32.mrb[3].mxu1  ;;  %v898_v48 = vsel %vm4247_vm3, %v891_v44, -1e+09 }
 0x2f9   : > { %v899_v50 = vsel %vm844_vm1, %v898_v48, -inf }
 0x2fa   : > { %900 = vmax.xlane.f32.xlu0 %v899_v50 }
 0x2fe   : > { %830 = vadd.xlane.f32.xlu0 %v829_v51  ;;  %v838_v51 = vld [vmem:[#allocation8 + $0x8] sm:$0xf] }
 0x314   : > { %969 = vrot.lane.b32.xlu0 %v4232_v34, %s3791_s4 }
 0x318   : > { %1088 = vrot.lane.b32.xlu0 %v4232_v34, %s3792_s2 }
 0x387   : > { %v901_v52 = vpop.xlane.xlu0 %900 }
 0x388   : > { %v902_v53 = vsub.f32 %v898_v48, %v901_v52 }
 0x38a   : > { %v903_v54 = vmul.f32 1.442695, %v902_v53 }
 0x38b   : > { %v831_v57 = vpop.xlane.xlu0 %830 }
 0x38c   : > { %3404 = vpow2.f32 %v903_v54  ;;  %v832_v58 = vadd.f32 1e-09, %v831_v57 }
 0x38e   : > { %3406 = vrcp.f32 %v832_v58 }
 0x38f   : > { %v970_v10 = vpop.permute.xlu0 %969 }
 0x390   : > { %v975_v12 = vsel %vm844_vm1, %v970_v10, 0 }
 0x393   : > { %v1089_v48 = vpop.permute.xlu0 %1088 }
 0x394   : > { %v1094_v50 = vsel %vm844_vm1, %v1089_v48, 0 }
 0x396   : > { %v3405_v55 = vpop.eup %3404 }
 0x397   : > { %v905_v56 = vsel %vm844_vm1, %v3405_v55, 0.0 }
 0x398   : > { %906 = vadd.xlane.f32.xlu1 %v905_v56  ;;  %v3407_v60 = vpop.eup %3406 }
 0x399   : > { %v834_v61 = vmul.f32 %v3407_v60, %v827_v49 }
 0x39b   : > { %v835_v62 = vmul.f32 0.5, %v834_v61 }
 0x39d   : > { %v4261_v1 = vrot.slane %v835_v62, %v4223_v21 }
 0x425   : > { %v907_v59 = vpop.xlane.xlu1 %906 }
 0x426   : > { %3408 = vrcp.f32 %v907_v59 }
 0x430   : > { %v3409_v63 = vpop.eup %3408 }
 0x431   : > { %v909_v2 = vmul.f32 %v3409_v63, %v3405_v55 }
 0x433   : > { %v910_v3 = vmul.f32 0.5, %v909_v2 }
 0x435   : > { %v915_v4 = vadd.f32 %v4261_v1, %v910_v3 }
 0x437   : > { %v916_v5 = vsel %vm844_vm1, %v915_v4, 0.0 }
 0x438   : > { %917 = vadd.xlane.f32.xlu1 %v916_v5 }
 0x4c5   : > { %v918_v6 = vpop.xlane.xlu1 %917 }
 0x4c6   : > { %v919_v7 = vadd.f32 1e-09, %v918_v6 }
 0x4c8   : > { %3410 = vrcp.f32 %v919_v7 }
 0x4d2   : > { %v3411_v8 = vpop.eup %3410 }
 0x4d3   : > { %v922_v9 = vmul.f32 %v3411_v8, %v915_v4 }
 0x4d5   : > { %v923_v11 = vpack.c.bf16 %v922_v9, %v922_v9 }
 0x4d7   : > { %3056 = vmatmul.mubr.msk.bf16.vlgmr.msra.gmra.mrb[4].mxu1 %vm844_vm1, %v923_v11 }
 0x4d8   : > { %3060 = vmatpush3.bf16.xpose.msra.mxu1 %v975_v12  ;;  %3061 = vmatprep.mubr.msk.bf16.mxu1 %vm3790_vm0, %v3789_v18 }
 0x4d9   : > { %3065 = vmatprep.subr.bf16.mxu1 %v3789_v18 }
 0x4df   : > { %3062 = vmatmul.mubr.msk.bf16.vlgmr.msra.gmra.mrb[8].mxu1 %vm844_vm1, %v837_v13  ;;  %v840_v13 = vld [vmem:[#allocation8 + $0x10] sm:$0xf] }
 0x4e0   : > { %3067 = vmatprep.mubr.msk.bf16.mxu1 %vm3790_vm0, %v3789_v18 }
 0x5aa   : > { %v4273_v14 = vpop.f32.mrb[4].mxu1 }
 0x5ab   : > { %v3057_v15 = vpop.f32.mrb[5].mxu1 }
 0x5ac   : > { %v964_v16 = vpop.f32.mrb[6].mxu1 }
 0x5ad   : > { %v3058_v17 = vpop.f32.mrb[7].mxu1 }
 0x5b2   : > { %v1011_v19 = vpop.f32.mrb[8].mxu1 }
 0x5b3   : > { %v1017_v22 = vmul.f32 0.25, %v1011_v19  ;;  %v3063_v24 = vpop.f32.mrb[9].mxu1 }
 0x5b4   : > { %v1014_v25 = vpop.f32.mrb[10].mxu1 }
 0x5b5   : > { %v3064_v26 = vpop.f32.mrb[11].mxu1  ;;  %v1018_v27 = vsel %vm4247_vm3, %v1017_v22, -1e+09 }
 0x5b6   : > { %v1019_v28 = vsel %vm844_vm1, %v1018_v27, -inf }
 0x5b7   : > { %1020 = vmax.xlane.f32.xlu1 %v1019_v28 }
 0x644   : > { %v1021_v29 = vpop.xlane.xlu1 %1020 }
 0x645   : > { %v1022_v30 = vsub.f32 %v1018_v27, %v1021_v29  ;;  %v841_v29 = vld [vmem:[#allocation8 + $0x14] sm:$0xf] }
 0x647   : > { %v1023_v31 = vmul.f32 1.442695, %v1022_v30 }
 0x649   : > { %3412 = vpow2.f32 %v1023_v31 }
 0x653   : > { %v3413_v32 = vpop.eup %3412 }
 0x654   : > { %v1025_v33 = vsel %vm844_vm1, %v3413_v32, 0.0 }
 0x655   : > { %1026 = vadd.xlane.f32.xlu1 %v1025_v33  ;;  %v842_v33 = vld [vmem:[#allocation8 + $0x18] sm:$0xf] }
 0x6e2   : > { %v1027_v36 = vpop.xlane.xlu1 %1026 }
 0x6e3   : > { %3414 = vrcp.f32 %v1027_v36  ;;  %v839_v36 = vld [vmem:[#allocation8 + $0xc] sm:$0xf] }
 0x6ed   : > { %v3415_v37 = vpop.eup %3414 }
 0x6ee   : > { %v1029_v38 = vmul.f32 %v3415_v37, %v3413_v32 }
 0x6f0   : > { %v1030_v39 = vmul.f32 0.5, %v1029_v38  ;;  %v843_v38 = vld [vmem:[#allocation8 + $0x1c] sm:$0xf] }
 0x6f2   : > { %v1031_v40 = vadd.f32 %v1030_v39, %v4261_v1 }
 0x6f4   : > { %v1032_v42 = vsel %vm844_vm1, %v1031_v40, 0.0 }
 0x6f5   : > { %1033 = vadd.xlane.f32.xlu1 %v1032_v42 }
 0x706   : > { %1041 = vrot.lane.b32.xlu1 %v4234_v35, %s3791_s4 }
 0x782   : > { %v1034_v43 = vpop.xlane.xlu1 %1033 }
 0x783   : > { %v1035_v44 = vadd.f32 1e-09, %v1034_v43 }
 0x785   : > { %3416 = vrcp.f32 %v1035_v44 }
 0x786   : > { %v1042_v45 = vpop.permute.xlu1 %1041 }
 0x787   : > { %3066 = vmatpush3.bf16.msra.mxu1 %v1042_v45 }
 0x788   : > { %3071 = vmatprep.subr.bf16.mxu1 %v3789_v18 }
 0x78f   : > { %v3417_v46 = vpop.eup %3416 }
 0x790   : > { %v1038_v47 = vmul.f32 %v3417_v46, %v1031_v40 }
 0x792   : > { %v1039_v49 = vpack.c.bf16 %v1038_v47, %v1038_v47 }
 0x794   : > { %3068 = vmatmul.mubr.msk.bf16.vlgmr.msra.gmra.mrb[12].mxu1 %vm844_vm1, %v1039_v49 }
 0x795   : > { %3072 = vmatpush3.bf16.xpose.msra.mxu1 %v1094_v50  ;;  %3073 = vmatprep.mubr.msk.bf16.mxu1 %vm3790_vm0, %v3789_v18 }
 0x796   : > { %3077 = vmatprep.subr.bf16.mxu1 %v3789_v18 }
 0x79c   : > { %3074 = vmatmul.mubr.msk.bf16.vlgmr.msra.gmra.mrb[16].mxu1 %vm844_vm1, %v838_v51 }
 0x79d   : > { %3079 = vmatprep.mubr.msk.bf16.mxu1 %vm3790_vm0, %v3789_v18 }
 0x867   : > { %v4292_v52 = vpop.f32.mrb[12].mxu1 }
 0x868   : > { %v3069_v53 = vpop.f32.mrb[13].mxu1 }
 0x869   : > { %v1084_v54 = vpop.f32.mrb[14].mxu1 }
 0x86a   : > { %v3070_v55 = vpop.f32.mrb[15].mxu1 }
 0x86f   : > { %v1130_v56 = vpop.f32.mrb[16].mxu1 }
 0x870   : > { %v1136_v57 = vmul.f32 0.25, %v1130_v56  ;;  %v3075_v58 = vpop.f32.mrb[17].mxu1 }
 0x871   : > { %v1133_v59 = vpop.f32.mrb[18].mxu1 }
 0x872   : > { %v3076_v60 = vpop.f32.mrb[19].mxu1  ;;  %v1137_v61 = vsel %vm4247_vm3, %v1136_v57, -1e+09 }
 0x873   : > { %v1138_v62 = vsel %vm844_vm1, %v1137_v61, -inf }
 0x874   : > { %1139 = vmax.xlane.f32.xlu0 %v1138_v62 }
 0x901   : > { %v1140_v63 = vpop.xlane.xlu0 %1139 }
 0x902   : > { %v1141_v2 = vsub.f32 %v1137_v61, %v1140_v63 }
 0x904   : > { %v1142_v3 = vmul.f32 1.442695, %v1141_v2 }
 0x906   : > { %3418 = vpow2.f32 %v1142_v3 }
 0x910   : > { %v3419_v4 = vpop.eup %3418 }
 0x911   : > { %v1144_v5 = vsel %vm844_vm1, %v3419_v4, 0.0 }
 0x912   : > { %1145 = vadd.xlane.f32.xlu1 %v1144_v5 }
 0x923   : > { %1206 = vrot.lane.b32.xlu1 %v4232_v34, %s3793_s15 }
 0x927   : > { %1324 = vrot.lane.b32.xlu1 %v4232_v34, %s3794_s26 }
 0x92b   : > { %1560 = vrot.lane.b32.xlu1 %v4232_v34, %s3795_s0 }
 0x99f   : > { %v1146_v6 = vpop.xlane.xlu1 %1145 }
 0x9a0   : > { %3420 = vrcp.f32 %v1146_v6 }
 0x9a3   : > { %v1207_v7 = vpop.permute.xlu1 %1206 }
 0x9a4   : > { %v1212_v31 = vsel %vm844_vm1, %v1207_v7, 0 }
 0x9a7   : > { %v1325_v8 = vpop.permute.xlu1 %1324 }
 0x9a8   : > { %v1330_v9 = vsel %vm844_vm1, %v1325_v8, 0 }
 0x9a9   : > { %3096 = vmatpush3.bf16.xpose.msra.mxu0 %v1330_v9 }
 0x9aa   : > { %v3421_v10 = vpop.eup %3420  ;;  %3107 = vmatprep.subr.bf16.mxu0 %v3789_v18 }
 0x9ab   : > { %v1148_v11 = vmul.f32 %v3421_v10, %v3419_v4  ;;  %v1561_v27 = vpop.permute.xlu1 %1560 }
 0x9ad   : > { %v1149_v12 = vmul.f32 0.5, %v1148_v11 }
 0x9af   : > { %v1150_v15 = vadd.f32 %v1149_v12, %v4261_v1 }
 0x9b0   : > { %3098 = vmatmul.mubr.msk.bf16.vlgmr.msra.gmra.mrb[4].mxu0 %vm844_vm1, %v840_v13 }
 0x9b1   : > { %v1151_v16 = vsel %vm844_vm1, %v1150_v15, 0.0  ;;  %3109 = vmatprep.mubr.msk.bf16.mxu0 %vm3790_vm0, %v3789_v18 }
 0x9b2   : > { %1152 = vadd.xlane.f32.xlu0 %v1151_v16 }
 0x9c8   : > { %1159 = vrot.lane.b32.xlu0 %v4234_v35, %s3792_s2 }
 0x9cc   : > { %1442 = vrot.lane.b32.xlu0 %v4232_v34, %s3796_s12 }
 0x9d0   : > { %1678 = vrot.lane.b32.xlu0 %v4232_v34, %s3797_s13  ;;  %v1566_v34 = vsel %vm844_vm1, %v1561_v27, 0 }
 0xa3f   : > { %v1153_v17 = vpop.xlane.xlu0 %1152 }
 0xa40   : > { %v1154_v19 = vadd.f32 1e-09, %v1153_v17 }
 0xa42   : > { %3422 = vrcp.f32 %v1154_v19 }
 0xa43   : > { %v1160_v22 = vpop.permute.xlu0 %1159 }
 0xa44   : > { %3078 = vmatpush3.bf16.msra.mxu1 %v1160_v22 }
 0xa45   : > { %3083 = vmatprep.subr.bf16.mxu1 %v3789_v18 }
 0xa47   : > { %v1443_v24 = vpop.permute.xlu0 %1442 }
 0xa48   : > { %v1448_v25 = vsel %vm844_vm1, %v1443_v24, 0 }
 0xa49   : > { %3108 = vmatpush3.bf16.xpose.msra.mxu0 %v1448_v25 }
 0xa4a   : > { %3119 = vmatprep.subr.bf16.mxu0 %v3789_v18 }
 0xa4b   : > { %v1679_v32 = vpop.permute.xlu0 %1678 }
 0xa4c   : > { %v3423_v26 = vpop.eup %3422  ;;  %v1684_v37 = vsel %vm844_vm1, %v1679_v32, 0 }
 0xa4d   : > { %v1157_v28 = vmul.f32 %v3423_v26, %v1150_v15 }
 0xa4f   : > { %v1158_v30 = vpack.c.bf16 %v1157_v28, %v1157_v28 }
 0xa50   : > { %3110 = vmatmul.mubr.msk.bf16.vlgmr.msra.gmra.mrb[8].mxu0 %vm844_vm1, %v841_v29 }
 0xa51   : > { %3080 = vmatmul.mubr.msk.bf16.vlgmr.msra.gmra.mrb[20].mxu1 %vm844_vm1, %v1158_v30  ;;  %3120 = vmatpush3.bf16.xpose.msra.mxu0 %v1566_v34 }
 0xa52   : > { %3084 = vmatpush3.bf16.xpose.msra.mxu1 %v1212_v31  ;;  %3121 = vmatprep.mubr.msk.bf16.mxu0 %vm3790_vm0, %v3789_v18 }
 0xa53   : > { %3085 = vmatprep.mubr.msk.bf16.mxu1 %vm3790_vm0, %v3789_v18  ;;  %3131 = vmatprep.subr.bf16.mxu0 %v3789_v18 }
 0xa54   : > { %3089 = vmatprep.subr.bf16.mxu1 %v3789_v18 }
 0xa58   : > { %3122 = vmatmul.mubr.msk.bf16.vlgmr.msra.gmra.mrb[12].mxu0 %vm844_vm1, %v842_v33 }
 0xa59   : > { %3086 = vmatmul.mubr.msk.bf16.vlgmr.msra.gmra.mrb[24].mxu1 %vm844_vm1, %v839_v36  ;;  %3132 = vmatpush3.bf16.xpose.msra.mxu0 %v1684_v37 }
 0xa5a   : > { %3133 = vmatprep.mubr.msk.bf16.mxu0 %vm3790_vm0, %v3789_v18  ;;  %3091 = vmatprep.mubr.msk.bf16.mxu1 %vm3790_vm0, %v3789_v18 }
 0xa5b   : > { %3143 = vmatprep.subr.bf16.mxu0 %v3789_v18 }
 0xa60   : > { %3134 = vmatmul.mubr.msk.bf16.vlgmr.msra.gmra.mrb[16].mxu0 %vm844_vm1, %v843_v38 }
 0xa61   : > { %3159 = vmatprep.mubr.msk.bf16.mxu0 %vm3790_vm0, %v3789_v18 }
 0xa83   : > { %v1366_v39 = vpop.f32.mrb[4].mxu0 }
 0xa84   : > { %v1372_v40 = vmul.f32 0.25, %v1366_v39  ;;  %v3099_v42 = vpop.f32.mrb[5].mxu0 }
 0xa85   : > { %v1369_v43 = vpop.f32.mrb[6].mxu0 }
 0xa86   : > { %v1373_v44 = vsel %vm4247_vm3, %v1372_v40, -1e+09  ;;  %v3100_v45 = vpop.f32.mrb[7].mxu0 }
 0xa87   : > { %v1374_v46 = vsel %vm844_vm1, %v1373_v44, -inf }
 0xa88   : > { %1375 = vmax.xlane.f32.xlu0 %v1374_v46 }
 0xb15   : > { %v1376_v47 = vpop.xlane.xlu0 %1375 }
 0xb16   : > { %v1377_v53 = vsub.f32 %v1373_v44, %v1376_v47 }
 0xb18   : > { %v1378_v61 = vmul.f32 1.442695, %v1377_v53 }
 0xb1a   : > { %3424 = vpow2.f32 %v1378_v61 }
 0xb23   : > { %v1484_v48 = vpop.f32.mrb[8].mxu0 }
 0xb24   : > { %v1490_v49 = vmul.f32 0.25, %v1484_v48  ;;  %v4344_v50 = vpop.f32.mrb[20].mxu1  ;;  %v3111_v51 = vpop.f32.mrb[9].mxu0 }
 0xb25   : > { %v3081_v54 = vpop.f32.mrb[21].mxu1  ;;  %v1487_v55 = vpop.f32.mrb[10].mxu0 }
 0xb26   : > { %v1202_v56 = vpop.f32.mrb[22].mxu1  ;;  %v1491_v57 = vsel %vm4247_vm3, %v1490_v49, -1e+09  ;;  %v3112_v58 = vpop.f32.mrb[11].mxu0 }
 0xb27   : > { %v3082_v59 = vpop.f32.mrb[23].mxu1  ;;  %v1492_v60 = vsel %vm844_vm1, %v1491_v57, -inf  ;;  %v3425_v22 = vpop.eup %3424 }
 0xb28   : > { %1493 = vmax.xlane.f32.xlu0 %v1492_v60  ;;  %v1380_v27 = vsel %vm844_vm1, %v3425_v22, 0.0 }
 0xb2b   : > { %v1602_v62 = vpop.f32.mrb[12].mxu0 }
 0xb2c   : > { %v1608_v63 = vmul.f32 0.25, %v1602_v62  ;;  %v1248_v2 = vpop.f32.mrb[24].mxu1  ;;  %v3123_v3 = vpop.f32.mrb[13].mxu0 }
 0xb2d   : > { %v1254_v4 = vmul.f32 0.25, %v1248_v2  ;;  %v3087_v5 = vpop.f32.mrb[25].mxu1  ;;  %v1605_v6 = vpop.f32.mrb[14].mxu0 }
 0xb2e   : > { %v1251_v7 = vpop.f32.mrb[26].mxu1  ;;  %v1609_v8 = vsel %vm4247_vm3, %v1608_v63, -1e+09  ;;  %v3124_v9 = vpop.f32.mrb[15].mxu0 }
 0xb2f   : > { %v3088_v10 = vpop.f32.mrb[27].mxu1  ;;  %v1610_v11 = vsel %vm844_vm1, %v1609_v8, -inf  ;;  %v1255_v12 = vsel %vm4247_vm3, %v1254_v4, -1e+09 }
 0xb30   : > { %1611 = vmax.xlane.f32.xlu0 %v1610_v11  ;;  %v1256_v13 = vsel %vm844_vm1, %v1255_v12, -inf }
 0xb31   : > { %1257 = vmax.xlane.f32.xlu1 %v1256_v13 }
 0xb33   : > { %v1720_v15 = vpop.f32.mrb[16].mxu0 }
 0xb34   : > { %v1726_v16 = vmul.f32 0.25, %v1720_v15  ;;  %v3135_v17 = vpop.f32.mrb[17].mxu0 }
 0xb35   : > { %v1723_v19 = vpop.f32.mrb[18].mxu0 }
 0xb36   : > { %v1727_v24 = vsel %vm4247_vm3, %v1726_v16, -1e+09  ;;  %v3136_v25 = vpop.f32.mrb[19].mxu0 }
 0xb37   : > { %v1728_v26 = vsel %vm844_vm1, %v1727_v24, -inf }
 0xb38   : > { %1729 = vmax.xlane.f32.xlu1 %v1728_v26 }
 0xb3c   : > { %1381 = vadd.xlane.f32.xlu1 %v1380_v27 }
 0xbb5   : > { %v1494_v28 = vpop.xlane.xlu0 %1493 }
 0xbb6   : > { %v1495_v29 = vsub.f32 %v1491_v57, %v1494_v28 }
 0xbb8   : > { %v1496_v36 = vmul.f32 1.442695, %v1495_v29 }
 0xbbd   : > { %v1612_v30 = vpop.xlane.xlu0 %1611 }
 0xbbe   : > { %v1613_v34 = vsub.f32 %v1609_v8, %v1612_v30  ;;  %v1258_v31 = vpop.xlane.xlu1 %1257 }
 0xbbf   : > { %v1259_v32 = vsub.f32 %v1255_v12, %v1258_v31 }
 0xbc0   : > { %v1614_v33 = vmul.f32 1.442695, %v1613_v34 }
 0xbc1   : > { %v1260_v37 = vmul.f32 1.442695, %v1259_v32 }
 0xbc2   : > { %3426 = vpow2.f32 %v1614_v33 }
 0xbc3   : > { %3428 = vpow2.f32 %v1260_v37 }
 0xbc4   : > { %3430 = vpow2.f32 %v1496_v36 }
 0xbc5   : > { %v1730_v41 = vpop.xlane.xlu1 %1729 }
 0xbc6   : > { %v1731_v38 = vsub.f32 %v1727_v24, %v1730_v41  ;;  %v1087_v24 = vpack.c.bf16 %v4292_v52, %v4292_v52 }
 0xbc8   : > { %v1732_v39 = vmul.f32 1.442695, %v1731_v38 }
 0xbc9   : > { %v1382_v40 = vpop.xlane.xlu1 %1381 }
 0xbca   : > { %3432 = vpow2.f32 %v1732_v39 }
 0xbcb   : > { %3434 = vrcp.f32 %v1382_v40 }
 0xbcc   : > { %v3427_v42 = vpop.eup %3426 }
 0xbcd   : > { %v3429_v43 = vpop.eup %3428  ;;  %v1616_v44 = vsel %vm844_vm1, %v3427_v42, 0.0 }
 0xbce   : > { %1617 = vadd.xlane.f32.xlu1 %v1616_v44  ;;  %v1262_v45 = vsel %vm844_vm1, %v3429_v43, 0.0  ;;  %v3431_v46 = vpop.eup %3430 }
 0xbcf   : > { %1263 = vadd.xlane.f32.xlu0 %v1262_v45  ;;  %v1498_v47 = vsel %vm844_vm1, %v3431_v46, 0.0 }
 0xbd3   : > { %1499 = vadd.xlane.f32.xlu0 %v1498_v47 }
 0xbd4   : > { %v3433_v48 = vpop.eup %3432 }
 0xbd5   : > { %v3435_v49 = vpop.eup %3434  ;;  %v1734_v51 = vsel %vm844_vm1, %v3433_v48, 0.0 }
 0xbd6   : > { %v1384_v53 = vmul.f32 %v3435_v49, %v3425_v22 }
 0xbd7   : > { %1735 = vadd.xlane.f32.xlu0 %v1734_v51 }
 0xbd8   : > { %v1385_v54 = vmul.f32 0.5, %v1384_v53 }
 0xbda   : > { %v4364_v55 = vadd.f32 %v1385_v54, %v4261_v1 }
 0xbdc   : > { %v1387_v56 = vsel %vm844_vm1, %v4364_v55, 0.0 }
 0xbdd   : > { %1388 = vadd.xlane.f32.xlu0 %v1387_v56  ;;  %v3317_v56 = vld [vmem:[#allocation11 + $0x8] sm:$0xff]  }
 0xc5b   : > { %v1618_v57 = vpop.xlane.xlu1 %1617 }
 0xc5c   : > { %3436 = vrcp.f32 %v1618_v57  ;;  %v1264_v58 = vpop.xlane.xlu0 %1263  ;;  %v3318_v57 = vld [vmem:[#allocation11 + $0x10] sm:$0xff]  }
 0xc5d   : > { %3438 = vrcp.f32 %v1264_v58 }
 0xc60   : > { %v1500_v59 = vpop.xlane.xlu0 %1499 }
 0xc61   : > { %3440 = vrcp.f32 %v1500_v59  ;;  %v3319_v59 = vld [vmem:[#allocation11 + $0x18] sm:$0xff]  }
 0xc64   : > { %v1736_v60 = vpop.xlane.xlu0 %1735 }
 0xc65   : > { %3442 = vrcp.f32 %v1736_v60 }
 0xc66   : > { %v3437_v61 = vpop.eup %3436 }
 0xc67   : > { %v3439_v62 = vpop.eup %3438  ;;  %v1620_v63 = vmul.f32 %v3437_v61, %v3427_v42 }
 0xc68   : > { %v1266_v3 = vmul.f32 %v3439_v62, %v3429_v43 }
 0xc69   : > { %v1621_v2 = vmul.f32 0.5, %v1620_v63 }
 0xc6a   : > { %v1267_v9 = vmul.f32 0.5, %v1266_v3  ;;  %v1389_v27 = vpop.xlane.xlu0 %1388 }
 0xc6b   : > { %v3441_v4 = vpop.eup %3440  ;;  %v4369_v5 = vadd.f32 %v1621_v2, %v4261_v1  ;;  %v1390_v29 = vadd.f32 1e-09, %v1389_v27  ;;  %v3320_v2 = vld [vmem:[#allocation11 + $0x20] sm:$0xff]  }
 0xc6c   : > { %v1502_v6 = vmul.f32 %v3441_v4, %v3431_v46  ;;  %v1268_v15 = vadd.f32 %v1267_v9, %v4261_v1  ;;  %v3321_v4 = vld [vmem:[#allocation11 + $0x28] sm:$0xff]   ;;  %v3322_v9 = vld [vmem:[#allocation11 + $0x30] sm:$0xff]  }
 0xc6d   : > { %v1623_v7 = vsel %vm844_vm1, %v4369_v5, 0.0 }
 0xc6e   : > { %1624 = vadd.xlane.f32.xlu0 %v1623_v7  ;;  %v1503_v8 = vmul.f32 0.5, %v1502_v6  ;;  %v1269_v19 = vsel %vm844_vm1, %v1268_v15, 0.0 }
 0xc6f   : > { %v3443_v10 = vpop.eup %3442 }
 0xc70   : > { %v1504_v11 = vadd.f32 %v1503_v8, %v4261_v1  ;;  %v1738_v12 = vmul.f32 %v3443_v10, %v3433_v48 }
 0xc72   : > { %v1505_v13 = vsel %vm844_vm1, %v1504_v11, 0.0  ;;  %v1739_v16 = vmul.f32 0.5, %v1738_v12 }
 0xc73   : > { %1506 = vadd.xlane.f32.xlu1 %v1505_v13 }
 0xc74   : > { %v4377_v17 = vadd.f32 %v1739_v16, %v4261_v1  ;;  %v1205_v1 = vpack.c.bf16 %v4344_v50, %v4344_v50 }
 0xc76   : > { %v1741_v22 = vsel %vm844_vm1, %v4377_v17, 0.0 }
 0xc77   : > { %1270 = vadd.xlane.f32.xlu1 %v1269_v19  ;;  %1742 = vadd.xlane.f32.xlu0 %v1741_v22 }
 0xc88   : > { %1277 = vrot.lane.b32.xlu1 %v4234_v35, %s3793_s15 }
 0xc8c   : > { %1513 = vrot.lane.b32.xlu1 %v4234_v35, %s3796_s12 }
 0xc8d   : > { %1395 = vrot.lane.b32.xlu0 %v4234_v35, %s3794_s26 }
 0xc90   : > { %1631 = vrot.lane.b32.xlu1 %v4234_v35, %s3795_s0 }
 0xc91   : > { %1800 = vrot.lane.b32.xlu0 %v1205_v1, %s3795_s0  ;;  %s4591_s0 = sld [smem:[#allocation35_spill]] }
 0xc94   : > { %1749 = vrot.lane.b32.xlu1 %v4234_v35, %s3797_s13 }
 0xc98   : > { %1797 = vrot.lane.b32.xlu1 %v1087_v24, %s3797_s13 }
 0xcfb   : > { %v1625_v30 = vpop.xlane.xlu0 %1624 }
 0xcfc   : > { %v1626_v37 = vadd.f32 1e-09, %v1625_v30  ;;  %v967_v30 = vpack.c.bf16 %v4273_v14, %v4273_v14  ;;  %v2879_v14 = vld [vmem:[%s4522_s7] ss:$0 sm:$0xff] }
 0xd00   : > { %v1507_v25 = vpop.xlane.xlu1 %1506 }
 0xd01   : > { %v1508_v34 = vadd.f32 1e-09, %v1507_v25 }
 0xd04   : > { %v1271_v26 = vpop.xlane.xlu1 %1270  ;;  %v1743_v31 = vpop.xlane.xlu0 %1742 }
 0xd05   : > { %v1272_v28 = vadd.f32 1e-09, %v1271_v26  ;;  %v1744_v42 = vadd.f32 1e-09, %v1743_v31 }
 0xd07   : > { %3444 = vrcp.f32 %v1272_v28 }
 0xd08   : > { %v1278_v50 = vpop.permute.xlu1 %1277  ;;  %3446 = vrcp.f32 %v1390_v29  ;;  %v1396_v36 = vpop.permute.xlu0 %1395 }
 0xd09   : > { %3090 = vmatpush3.bf16.msra.mxu1 %v1278_v50  ;;  %3448 = vrcp.f32 %v1508_v34 }
 0xd0a   : > { %3101 = vmatprep.subr.bf16.mxu1 %v3789_v18  ;;  %3450 = vrcp.f32 %v1626_v37 }
 0xd0b   : > { %3452 = vrcp.f32 %v1744_v42 }
 0xd0c   : > { %v1514_v40 = vpop.permute.xlu1 %1513  ;;  %v1801_v50 = vpop.permute.xlu0 %1800 }
 0xd10   : > { %v1632_v46 = vpop.permute.xlu1 %1631 }
 0xd11   : > { %v3445_v35 = vpop.eup %3444 }
 0xd12   : > { %v1275_v32 = vmul.f32 %v3445_v35, %v1268_v15  ;;  %v3447_v33 = vpop.eup %3446 }
 0xd13   : > { %v1393_v41 = vmul.f32 %v3447_v33, %v4364_v55  ;;  %v3449_v39 = vpop.eup %3448  ;;  %v3316_v55 = vld [vmem:[#allocation11] sm:$0xff]  }
 0xd14   : > { %v1276_v52 = vpack.c.bf16 %v1275_v32, %v1275_v32  ;;  %v1511_v43 = vmul.f32 %v3449_v39, %v1504_v11  ;;  %v3451_v45 = vpop.eup %3450  ;;  %v1750_v51 = vpop.permute.xlu1 %1749  ;;  %3144 = vmatpush3.bf16.msra.mxu0 %v3316_v55  ;;  %v3323_v11 = vld [vmem:[#allocation11 + $0x38] sm:$0xff]   ;;  %v3332_v55 = vld [vmem:[#allocation13 + $0x24] ss:$16 sps:$4 sm:$0xff]  }
 0xd15   : > { %v1394_v38 = vpack.c.bf16 %v1393_v41, %v1393_v41  ;;  %v1629_v47 = vmul.f32 %v3451_v45, %v4369_v5  ;;  %v3453_v49 = vpop.eup %3452  ;;  %3145 = vmatprep.subr.bf16.mxu0 %v3789_v18 }
 0xd16   : > { %3092 = vmatmul.mubr.msk.bf16.vlgmr.msra.gmra.mrb[28].mxu1 %vm844_vm1, %v1276_v52  ;;  %v1512_v44 = vpack.c.bf16 %v1511_v43, %v1511_v43  ;;  %v1747_v53 = vmul.f32 %v3453_v49, %v4377_v17  ;;  %v1950_v43 = vld [vmem:[#allocation7] sm:$0xff]  ;;  %v3324_v49 = vld [vmem:[#allocation13] ss:$16 sps:$4 sm:$0xff]  }
 0xd17   : > { %3102 = vmatpush3.bf16.msra.mxu1 %v1396_v36  ;;  %3103 = vmatprep.mubr.msk.bf16.mxu1 %vm3790_vm0, %v3789_v18  ;;  %v1630_v48 = vpack.c.bf16 %v1629_v47, %v1629_v47 }
 0xd18   : > { %3113 = vmatprep.subr.bf16.mxu1 %v3789_v18  ;;  %v1748_v54 = vpack.c.bf16 %v1747_v53, %v1747_v53  ;;  %3146 = vmatpush3.bf16.msra.mxu0 %v3317_v56  ;;  %v3327_v53 = vld [vmem:[#allocation13 + $0x8] ss:$16 sps:$4 sm:$0xff]   ;;  %v3335_v56 = vld [vmem:[#allocation13 + $0x2c] ss:$16 sps:$4 sm:$0xff]  }
 0xd19   : > { %3147 = vmatprep.subr.bf16.mxu0 %v3789_v18 }
 0xd1c   : > { %3148 = vmatpush3.bf16.msra.mxu0 %v3318_v57  ;;  %v3333_v57 = vld [vmem:[#allocation13 + $0x28] ss:$16 sps:$4 sm:$0xff]  }
 0xd1d   : > { %3149 = vmatprep.subr.bf16.mxu0 %v3789_v18 }
 0xd1e   : > { %3104 = vmatmul.mubr.msk.bf16.vlgmr.msra.gmra.mrb[32].mxu1 %vm844_vm1, %v1394_v38 }
 0xd1f   : > { %3114 = vmatpush3.bf16.msra.mxu1 %v1514_v40  ;;  %3115 = vmatprep.mubr.msk.bf16.mxu1 %vm3790_vm0, %v3789_v18 }
 0xd20   : > { %3125 = vmatprep.subr.bf16.mxu1 %v3789_v18  ;;  %3150 = vmatpush3.bf16.msra.mxu0 %v3319_v59  ;;  %v3341_v59 = vld [vmem:[#allocation13 + $0x4c] ss:$16 sps:$4 sm:$0xff]  }
 0xd21   : > { %3151 = vmatprep.subr.bf16.mxu0 %v3789_v18 }
 0xd24   : > { %3152 = vmatpush3.bf16.msra.mxu0 %v3320_v2 }
 0xd25   : > { %3153 = vmatprep.subr.bf16.mxu0 %v3789_v18 }
 0xd26   : > { %3116 = vmatmul.mubr.msk.bf16.vlgmr.msra.gmra.mrb[36].mxu1 %vm844_vm1, %v1512_v44 }
 0xd27   : > { %3126 = vmatpush3.bf16.msra.mxu1 %v1632_v46  ;;  %3127 = vmatprep.mubr.msk.bf16.mxu1 %vm3790_vm0, %v3789_v18 }
 0xd28   : > { %3137 = vmatprep.subr.bf16.mxu1 %v3789_v18  ;;  %3154 = vmatpush3.bf16.msra.mxu0 %v3321_v4  ;;  %v3344_v4 = vld [vmem:[#allocation13 + $0x64] ss:$16 sps:$4 sm:$0xff]  }
 0xd29   : > { %3155 = vmatprep.subr.bf16.mxu0 %v3789_v18 }
 0xd2c   : > { %3156 = vmatpush3.bf16.msra.mxu0 %v3322_v9  ;;  %v3353_v9 = vld [vmem:[#allocation13 + $0x8c] ss:$16 sps:$4 sm:$0xff]  }
 0xd2d   : > { %3157 = vmatprep.subr.bf16.mxu0 %v3789_v18 }
 0xd2e   : > { %3128 = vmatmul.mubr.msk.bf16.vlgmr.msra.gmra.mrb[40].mxu1 %vm844_vm1, %v1630_v48 }
 0xd2f   : > { %3138 = vmatpush3.bf16.msra.mxu1 %v1750_v51  ;;  %3139 = vmatprep.mubr.msk.bf16.mxu1 %vm3790_vm0, %v3789_v18  ;;  %v1798_v18 = vpop.permute.xlu1 %1797  ;;  %v3326_v51 = vld [vmem:[#allocation13 + $0x4] ss:$16 sps:$4 sm:$0xff]  }
 0xd30   : > { %3158 = vmatpush3.bf16.msra.mxu0 %v3323_v11  ;;  %v1819_v31 = vsel %vm844_vm1, %v967_v30, %v1798_v18  ;;  %2195 = vmatprep.subr.bf16.mxu1 %v3326_v51  ;;  %v3351_v11 = vld [vmem:[#allocation13 + $0x88] ss:$16 sps:$4 sm:$0xff]   ;;  %v3388_v51 = vld [vmem:[#allocation14 + $0x60] sm:$0xff]  }
 0xd31   : > { %v1822_v32 = vsel %vm1820_vm5, %v1819_v31, %v1801_v50  ;;  %v2888_v31 = vld [vmem:[%s4523_s8] ss:$0 sm:$0xff] }
 0xd36   : > { %3140 = vmatmul.mubr.msk.bf16.vlgmr.msra.gmra.mrb[44].mxu1 %vm844_vm1, %v1748_v54  ;;  %v3329_v54 = vld [vmem:[#allocation13 + $0xc] ss:$16 sps:$4 sm:$0xff]  }
 0xd37   : > { %2227 = vmatprep.mubr.bf16.mxu1 %v3788_v0  ;;  %2236 = vmatprep.subr.bf16.mxu0 %v3329_v54  ;;  %v3390_v54 = vld [vmem:[#allocation14 + $0x20] sm:$0xff]  }
 0xd38   : > { %2196 = vmatpush1.bf16.msra.mxu1 %v3324_v49  ;;  %v3387_v49 = vld [vmem:[#allocation14 + $0x98] sm:$0xff]  }
 0xd39   : > { %2197 = vmatprep.subr.bf16.mxu1 %v3332_v55  ;;  %v3391_v55 = vld [vmem:[#allocation14 + $0xa0] sm:$0xff]  }
 0xde9   : > { %v1317_v58 = vpop.f32.mrb[28].mxu1 }
 0xdea   : > { %v1323_v60 = vpack.c.bf16 %v1317_v58, %v1317_v58  ;;  %v3093_v61 = vpop.f32.mrb[29].mxu1  ;;  %v3338_v58 = vld [vmem:[#allocation13 + $0x44] ss:$16 sps:$4 sm:$0xff]  }
 0xdeb   : > { %v1320_v62 = vpop.f32.mrb[30].mxu1  ;;  %v3339_v61 = vld [vmem:[#allocation13 + $0x48] ss:$16 sps:$4 sm:$0xff]  }
 0xdec   : > { %1803 = vrot.lane.b32.xlu1 %v1323_v60, %s3796_s12  ;;  %v3094_v63 = vpop.f32.mrb[31].mxu1  ;;  %v3336_v60 = vld [vmem:[#allocation13 + $0x40] ss:$16 sps:$4 sm:$0xff]  }
 0xdf1   : > { %v1435_v3 = vpop.f32.mrb[32].mxu1 }
 0xdf2   : > { %v1441_v5 = vpack.c.bf16 %v1435_v3, %v1435_v3  ;;  %v3105_v6 = vpop.f32.mrb[33].mxu1 }
 0xdf3   : > { %v1438_v7 = vpop.f32.mrb[34].mxu1  ;;  %v3342_v6 = vld [vmem:[#allocation13 + $0x60] ss:$16 sps:$4 sm:$0xff]  }
 0xdf4   : > { %1806 = vrot.lane.b32.xlu0 %v1441_v5, %s3794_s26  ;;  %v3106_v8 = vpop.f32.mrb[35].mxu1  ;;  %v3347_v5 = vld [vmem:[#allocation13 + $0x6c] ss:$16 sps:$4 sm:$0xff]   ;;  %v3345_v7 = vld [vmem:[#allocation13 + $0x68] ss:$16 sps:$4 sm:$0xff]  }
 0xdf5   : > { %v3350_v8 = vld [vmem:[#allocation13 + $0x84] ss:$16 sps:$4 sm:$0xff]  }
 0xdf9   : > { %v1553_v10 = vpop.f32.mrb[36].mxu1 }
 0xdfa   : > { %v1559_v12 = vpack.c.bf16 %v1553_v10, %v1553_v10  ;;  %v3117_v13 = vpop.f32.mrb[37].mxu1  ;;  %v3348_v10 = vld [vmem:[#allocation13 + $0x80] ss:$16 sps:$4 sm:$0xff]  }
 0xdfb   : > { %v1556_v15 = vpop.f32.mrb[38].mxu1  ;;  %v3359_v13 = vld [vmem:[#allocation13 + $0xac] ss:$16 sps:$4 sm:$0xff]  }
 0xdfc   : > { %1809 = vrot.lane.b32.xlu1 %v1559_v12, %s3793_s15  ;;  %v3118_v16 = vpop.f32.mrb[39].mxu1  ;;  %v3356_v12 = vld [vmem:[#allocation13 + $0xa4] ss:$16 sps:$4 sm:$0xff]   ;;  %v3354_v15 = vld [vmem:[#allocation13 + $0xa0] ss:$16 sps:$4 sm:$0xff]  }
 0xdfd   : > { %v3357_v16 = vld [vmem:[#allocation13 + $0xa8] ss:$16 sps:$4 sm:$0xff]  }
 0xe01   : > { %v1671_v17 = vpop.f32.mrb[40].mxu1 }
 0xe02   : > { %v1677_v19 = vpack.c.bf16 %v1671_v17, %v1671_v17  ;;  %v3129_v22 = vpop.f32.mrb[41].mxu1  ;;  %v3362_v17 = vld [vmem:[#allocation13 + $0xc4] ss:$16 sps:$4 sm:$0xff]  }
 0xe03   : > { %v1674_v1 = vpop.f32.mrb[42].mxu1  ;;  %v3360_v22 = vld [vmem:[#allocation13 + $0xc0] ss:$16 sps:$4 sm:$0xff]  }
 0xe04   : > { %1812 = vrot.lane.b32.xlu0 %v1677_v19, %s3792_s2  ;;  %v3130_v24 = vpop.f32.mrb[43].mxu1  ;;  %v3365_v19 = vld [vmem:[#allocation13 + $0xcc] ss:$16 sps:$4 sm:$0xff]   ;;  %v3363_v1 = vld [vmem:[#allocation13 + $0xc8] ss:$16 sps:$4 sm:$0xff]   ;;  %s2845_s2 = sshll.u32 %s4178_s23, 2 }
 0xe05   : > { %v3368_v24 = vld [vmem:[#allocation13 + $0xe4] ss:$16 sps:$4 sm:$0xff]   ;;  %s661_s10 = scalar_lea.vmem [#allocation16], %s2845_s2 }
 0xe06   : > { %s2672_s14 = sshll.u32 %s661_s10, 4  ;;  %s4473_s14 = int_to_ptr.vmem [resolvable:$true] %s2672_s14 }
 0xe07   : > { %s3686_s16 = scalar_lea.vmem %s4473_s14, 64  ;;  %p3693_p9 = scmp.lt.s32.totalorder %s4473_s14, %s3691_s11 }
 0xe08   : > { %p3687_p13 = scmp.ne.s32.totalorder %s4473_s14, %s3686_s16 }
 0xe09   : > { %v1789_v25 = vpop.f32.mrb[44].mxu1 }
 0xe0a   : > { %v1795_v26 = vpack.c.bf16 %v1789_v25, %v1789_v25  ;;  %v3141_v27 = vpop.f32.mrb[45].mxu1  ;;  %v3371_v25 = vld [vmem:[#allocation13 + $0xec] ss:$16 sps:$4 sm:$0xff]   ;;  %p3688_p10 = pnand %p3687_p13, %p4594_p0 }
 0xe0b   : > { %v1792_v28 = vpop.f32.mrb[46].mxu1  ;;  %v3369_v27 = vld [vmem:[#allocation13 + $0xe8] ss:$16 sps:$4 sm:$0xff]  }
 0xe0c   : > { %1815 = vrot.lane.b32.xlu1 %v1795_v26, %s3791_s4  ;;  %v3142_v29 = vpop.f32.mrb[47].mxu1  ;;  %v3366_v26 = vld [vmem:[#allocation13 + $0xe0] ss:$16 sps:$4 sm:$0xff]   ;;  %s4590_s4 = sld [smem:[#allocation34_spill]]  ;;  %p3689_p11 = pneg %p3688_p10 }
 0xe0d   : > { %v3372_v28 = vld [vmem:[#allocation14 + $0x40] sm:$0xff]  }
 0xe0e   : > { %v3373_v29 = vld [vmem:[#allocation14 + $0xc0] sm:$0xff]  }
 0xe5e   : > { %v1804_v34 = vpop.permute.xlu1 %1803 }
 0xe5f   : > { %v1825_v33 = vsel %vm1823_vm6, %v1822_v32, %v1804_v34  ;;  %v2889_v32 = vld [vmem:[%s4524_s9] ss:$0 sm:$0xff] }
 0xe66   : > { %v1807_v35 = vpop.permute.xlu0 %1806 }
 0xe67   : > { %v1828_v37 = vsel %vm1826_vm7, %v1825_v33, %v1807_v35 }
 0xe6e   : > { %v1810_v52 = vpop.permute.xlu1 %1809 }
 0xe6f   : > { %v1831_v41 = vsel %vm1829_vm8, %v1828_v37, %v1810_v52  ;;  %v3375_v37 = vld [vmem:[#allocation14 + $0x80] sm:$0xff]  }
 0xe76   : > { %v1813_v36 = vpop.permute.xlu0 %1812 }
 0xe77   : > { %v1834_v38 = vsel %vm1832_vm9, %v1831_v41, %v1813_v36  ;;  %v3374_v36 = vld [vmem:[#allocation14] sm:$0xff]  }
 0xe7e   : > { %v1816_v39 = vpop.permute.xlu1 %1815 }
 0xe7f   : > { %v1837_v40 = vsel %vm1835_vm10, %v1834_v38, %v1816_v39  ;;  %v3376_v38 = vld [vmem:[#allocation14 + $0x48] sm:$0xff]  }
 0xe80   : > { %3160 = vmatmul.mubr.bf16.vlgmr.msra.gmra.mrb[20].mxu0 %v1837_v40  ;;  %v3377_v39 = vld [vmem:[#allocation14 + $0xc8] sm:$0xff]  }
 0xe81   : > { %2268 = vmatprep.mubr.bf16.mxu0 %v3788_v0  ;;  %v3330_v0 = vld [vmem:[#allocation13 + $0x20] ss:$16 sps:$4 sm:$0xff]   ;;  %2237 = vmatpush1.bf16.msra.mxu0 %v3327_v53  ;;  %v3378_v40 = vld [vmem:[#allocation14 + $0x8] sm:$0xff]  }
 0xe82   : > { %2238 = vmatprep.subr.bf16.mxu0 %v3335_v56  ;;  %2198 = vmatpush1.bf16.msra.mxu1 %v3330_v0  ;;  %v3389_v53 = vld [vmem:[#allocation14 + $0xe0] sm:$0xff]   ;;  %v3392_v56 = vld [vmem:[#allocation14 + $0x68] sm:$0xff]  }
 0xe83   : > { %2199 = vmatprep.subr.bf16.mxu1 %v3338_v58  ;;  %v3393_v0 = vld [vmem:[#allocation14 + $0xe8] sm:$0xff]  }
 0xe84   : > { %v3395_v58 = vld [vmem:[#allocation14 + $0xa8] sm:$0xff]  }
 0xe85   : > { %2239 = vmatpush1.bf16.msra.mxu0 %v3333_v57  ;;  %v3394_v57 = vld [vmem:[#allocation14 + $0x28] sm:$0xff]  }
 0xe86   : > { %2240 = vmatprep.subr.bf16.mxu0 %v3341_v59  ;;  %2200 = vmatpush1.bf16.msra.mxu1 %v3336_v60  ;;  %v3396_v59 = vld [vmem:[#allocation14 + $0x70] sm:$0xff]  }
 0xe87   : > { %2201 = vmatprep.subr.bf16.mxu1 %v3344_v4  ;;  %v3397_v60 = vld [vmem:[#allocation14 + $0xf0] sm:$0xff]   ;;  %v3403_v4 = vld [vmem:[#allocation14 + $0xb8] sm:$0xff]  }
 0xe89   : > { %2241 = vmatpush1.bf16.msra.mxu0 %v3339_v61  ;;  %v3398_v61 = vld [vmem:[#allocation14 + $0x30] sm:$0xff]  }
 0xe8a   : > { %2242 = vmatprep.subr.bf16.mxu0 %v3347_v5  ;;  %2202 = vmatpush1.bf16.msra.mxu1 %v3342_v6  ;;  %v2025_v5 = vsub.s32 2, %v4220_v20  ;;  %v2013_v6 = vld [vmem:[%s4589_s20] sm:$0xf]  ;;  %s2659_s20 = scalar_lea.sflag [#allocation4], %s4178_s23 }
 0xe8b   : > { %2203 = vmatprep.subr.bf16.mxu1 %v3350_v8  ;;  %v2018_v8 = vrot.slane %v2013_v6, %v4223_v21 }
 0xe8d   : > { %2243 = vmatpush1.bf16.msra.mxu0 %v3345_v7  ;;  %v2029_v7 = vsub.s32 3, %v4220_v20 }
 0xe8e   : > { %2244 = vmatprep.subr.bf16.mxu0 %v3353_v9  ;;  %2204 = vmatpush1.bf16.msra.mxu1 %v3348_v10  ;;  %v2026_v9 = vrot.slane %v2013_v6, %v2025_v5  ;;  %v2022_v10 = vrot.slane %v2013_v6, %v689_v23 }
 0xe8f   : > { %2205 = vmatprep.subr.bf16.mxu1 %v3356_v12 }
 0xe91   : > { %2245 = vmatpush1.bf16.msra.mxu0 %v3351_v11  ;;  %v2030_v11 = vrot.slane %v2013_v6, %v2029_v7 }
 0xe92   : > { %2246 = vmatprep.subr.bf16.mxu0 %v3359_v13  ;;  %2206 = vmatpush1.bf16.msra.mxu1 %v3354_v15 }
 0xe93   : > { %2207 = vmatprep.subr.bf16.mxu1 %v3362_v17 }
 0xe95   : > { %2247 = vmatpush1.bf16.msra.mxu0 %v3357_v16 }
 0xe96   : > { %2248 = vmatprep.subr.bf16.mxu0 %v3365_v19  ;;  %2208 = vmatpush1.bf16.msra.mxu1 %v3360_v22 }
 0xe97   : > { %2209 = vmatprep.subr.bf16.mxu1 %v3368_v24 }
 0xe99   : > { %2249 = vmatpush1.bf16.msra.mxu0 %v3363_v1 }
 0xe9a   : > { %2250 = vmatprep.subr.bf16.mxu0 %v3371_v25  ;;  %2210 = vmatpush1.bf16.msra.mxu1 %v3366_v26 }
 0xe9b   : > { %3003 = vmatprep.subr.bf16.mxu1 %v3372_v28 }
 0xe9d   : > { %2251 = vmatpush1.bf16.msra.mxu0 %v3369_v27 }
 0xe9e   : > { %3025 = vmatprep.subr.bf16.mxu0 %v3373_v29 }
 0xf53   : > { %v1944_v42 = vpop.f32.mrb[20].mxu0 }
 0xf54   : > { %v1945_v44 = vadd.f32 %v2879_v14, %v1944_v42  ;;  %v3161_v45 = vpop.f32.mrb[21].mxu0  ;;  %v3379_v14 = vld [vmem:[#allocation14 + $0x88] sm:$0xff]   ;;  %v3380_v42 = vld [vmem:[#allocation14 + $0x50] sm:$0xff]  }
 0xf55   : > { %v1947_v46 = vpop.f32.mrb[22].mxu0  ;;  %v3383_v45 = vld [vmem:[#allocation14 + $0x90] sm:$0xff]  }
 0xf56   : > { %v3162_v47 = vpop.f32.mrb[23].mxu0  ;;  %v1951_v48 = vadd.f32 %v1950_v43, %v1945_v44  ;;  %v3381_v43 = vld [vmem:[#allocation14 + $0xd0] sm:$0xff]   ;;  %v3384_v46 = vld [vmem:[#allocation14 + $0x58] sm:$0xff]  }
 0xf57   : > { %v3382_v44 = vld [vmem:[#allocation14 + $0x10] sm:$0xff]   ;;  %v3385_v47 = vld [vmem:[#allocation14 + $0xd8] sm:$0xff]  }
 0xf58   : > { %1952 = vadd.xlane.f32.xlu0 %v1951_v48 }
 0xfe5   : > { %v1953_v62 = vpop.xlane.xlu0 %1952 }
 0xfe6   : > { %v1955_v63 = vmul.f32 0.0078125, %v1953_v62  ;;  %v3399_v62 = vld [vmem:[#allocation14 + $0xb0] sm:$0xff]  }
 0xfe8   : > { %v1956_v2 = vsub.f32 %v1951_v48, %v1955_v63  ;;  %v3386_v48 = vld [vmem:[#allocation14 + $0x18] sm:$0xff]  }
 0xfe9   : > { %v3400_v63 = vld [vmem:[#allocation14 + $0x78] sm:$0xff]  }
 0xfea   : > { %v1957_v3 = vmul.f32 %v1956_v2, %v1956_v2 }
 0xfec   : > { %1958 = vadd.xlane.f32.xlu1 %v1957_v3  ;;  %v3402_v3 = vld [vmem:[#allocation14 + $0x38] sm:$0xff]  }
0x1079   : > { %v1959_v18 = vpop.xlane.xlu1 %1958 }
0x107a   : > { %v1960_v50 = vmul.f32 0.0078125, %v1959_v18 }
0x107c   : > { %v1961_v30 = vadd.f32 1e-05, %v1960_v50 }
0x107e   : > { %3454 = vrsqrt.f32 %v1961_v30 }
0x1088   : > { %v3455_v34 = vpop.eup %3454 }
0x1089   : > { %v1963_v35 = vmul.f32 %v3455_v34, %v1956_v2  ;;  %v3401_v2 = vld [vmem:[#allocation14 + $0xf8] sm:$0xff]  }
0x108b   : > { %v1971_v52 = vmul.f32 %v2888_v31, %v1963_v35  ;;  %v2922_v35 = vld [vmem:[%s4590_s4] ss:$0 sm:$0xff]  ;;  %s3692_s4 = scalar_lea.vmem %s3691_s11, 128 }
0x108c   : > { %p3694_p6 = scmp.lt.s32.totalorder %s3692_s4, %s3686_s16 }
0x108d   : > { %v4444_v33 = vadd.f32 %v2889_v32, %v1971_v52 }
0x108e   : > { %p3695_p2 = por %p3694_p6, %p3693_p9 }
0x108f   : > { %v1980_v41 = vpack.c.bf16 %v4444_v33, %v4444_v33 }
0x1090   : > { %p3696_p8 = pnand %p3695_p2, %p3689_p11 }
0x1091   : > { %2228 = vmatmul.mubr.bf16.vlgmr.msra.gmra.mrb[48].mxu1 %v1980_v41  ;;  %2269 = vmatmul.mubr.bf16.vlgmr.msra.gmra.mrb[24].mxu0 %v1980_v41 }
0x1092   : > { %3004 = vmatpush3.bf16.msra.mxu1 %v3374_v36  ;;  %3026 = vmatpush3.bf16.msra.mxu0 %v3375_v37 }
0x1093   : > { %3005 = vmatprep.subr.bf16.mxu1 %v3376_v38  ;;  %3027 = vmatprep.subr.bf16.mxu0 %v3377_v39 }
0x1096   : > { %3006 = vmatpush3.bf16.msra.mxu1 %v3378_v40  ;;  %3028 = vmatpush3.bf16.msra.mxu0 %v3379_v14 }
0x1097   : > { %3007 = vmatprep.subr.bf16.mxu1 %v3380_v42  ;;  %3029 = vmatprep.subr.bf16.mxu0 %v3381_v43 }
0x109a   : > { %3008 = vmatpush3.bf16.msra.mxu1 %v3382_v44  ;;  %3030 = vmatpush3.bf16.msra.mxu0 %v3383_v45 }
0x109b   : > { %3009 = vmatprep.subr.bf16.mxu1 %v3384_v46  ;;  %3031 = vmatprep.subr.bf16.mxu0 %v3385_v47 }
0x109e   : > { %3010 = vmatpush3.bf16.msra.mxu1 %v3386_v48  ;;  %3032 = vmatpush3.bf16.msra.mxu0 %v3387_v49 }
0x109f   : > { %3011 = vmatprep.subr.bf16.mxu1 %v3388_v51  ;;  %3033 = vmatprep.subr.bf16.mxu0 %v3389_v53 }
0x10a2   : > { %3012 = vmatpush3.bf16.msra.mxu1 %v3390_v54  ;;  %3034 = vmatpush3.bf16.msra.mxu0 %v3391_v55  ;;  %v2955_v54 = vld [vmem:[%s4591_s0] ss:$0 sm:$0xff] }
0x10a3   : > { %3013 = vmatprep.subr.bf16.mxu1 %v3392_v56  ;;  %3035 = vmatprep.subr.bf16.mxu0 %v3393_v0  ;;  %v2956_v55 = vld [vmem:[%s4592_s25] ss:$0 sm:$0xff] }
0x10a6   : > { %3014 = vmatpush3.bf16.msra.mxu1 %v3394_v57  ;;  %3036 = vmatpush3.bf16.msra.mxu0 %v3395_v58 }
0x10a7   : > { %3015 = vmatprep.subr.bf16.mxu1 %v3396_v59  ;;  %3037 = vmatprep.subr.bf16.mxu0 %v3397_v60 }
0x10aa   : > { %3016 = vmatpush3.bf16.msra.mxu1 %v3398_v61  ;;  %3038 = vmatpush3.bf16.msra.mxu0 %v3399_v62 }
0x10ab   : > { %3017 = vmatprep.subr.bf16.mxu1 %v3400_v63  ;;  %3039 = vmatprep.subr.bf16.mxu0 %v3401_v2 }
0x10ae   : > { %3018 = vmatpush3.bf16.msra.mxu1 %v3402_v3  ;;  %3040 = vmatpush3.bf16.msra.mxu0 %v3403_v4 }
0x1164   : > { %v2229_v12 = vpop.f32.mrb[48].mxu1  ;;  %v2270_v13 = vpop.f32.mrb[24].mxu0 }
0x1165   : > { %v2230_v15 = vadd.f32 %v2229_v12, %v2018_v8  ;;  %v2271_v16 = vadd.f32 %v2270_v13, %v2026_v9  ;;  %v2231_v17 = vpop.f32.mrb[49].mxu1  ;;  %v2272_v19 = vpop.f32.mrb[25].mxu0 }
0x1166   : > { %v2232_v22 = vadd.f32 %v2231_v17, %v2022_v10  ;;  %v2273_v1 = vadd.f32 %v2272_v19, %v2030_v11  ;;  %v2233_v24 = vpop.f32.mrb[50].mxu1  ;;  %v2274_v25 = vpop.f32.mrb[26].mxu0 }
0x1167   : > { %v2277_v26 = vmax.f32 %v2230_v15, 0.0  ;;  %v2279_v27 = vmax.f32 %v2271_v16, 0.0  ;;  %v2234_v28 = vpop.f32.mrb[51].mxu1  ;;  %v2275_v29 = vpop.f32.mrb[27].mxu0 }
0x1168   : > { %v2278_v21 = vmax.f32 %v2232_v22, 0.0  ;;  %v2280_v18 = vmax.f32 %v2273_v1, 0.0 }
0x1169   : > { %v2281_v23 = vpack.c.bf16 %v2277_v26, %v2277_v26  ;;  %v2283_v30 = vpack.c.bf16 %v2279_v27, %v2279_v27 }
0x116a   : > { %v2282_v50 = vpack.c.bf16 %v2278_v21, %v2278_v21  ;;  %v2284_v20 = vpack.c.bf16 %v2280_v18, %v2280_v18 }
0x116c   : > { %2580 = vmatprep.mubr.bf16.mxu1 %v2282_v50  ;;  %2620 = vmatprep.mubr.bf16.mxu0 %v2284_v20 }
0x116d   : > { %2581 = vmatmul.mubr.bf16.vlgmr.msra.gmra.mrb[52].mxu1 %v2281_v23  ;;  %2621 = vmatmul.mubr.bf16.vlgmr.msra.gmra.mrb[28].mxu0 %v2283_v30 }
0x1240   : > { %v3019_v34 = vpop.f32.mrb[52].mxu1  ;;  %v3041_v31 = vpop.f32.mrb[28].mxu0 }
0x1241   : > { %v3020_v32 = vpop.f32.mrb[53].mxu1  ;;  %v3042_v52 = vpop.f32.mrb[29].mxu0 }
0x1242   : > { %v3021_v36 = vadd.f32 %v3020_v32, %v3019_v34  ;;  %v3043_v37 = vadd.f32 %v3042_v52, %v3041_v31  ;;  %v3022_v41 = vpop.f32.mrb[54].mxu1  ;;  %v3044_v38 = vpop.f32.mrb[30].mxu0 }
0x1243   : > { %v3023_v39 = vpop.f32.mrb[55].mxu1  ;;  %v3045_v40 = vpop.f32.mrb[31].mxu0 }
0x1244   : > { %v2583_v14 = vadd.f32 %v3021_v36, %v2922_v35 }
0x1246   : > { %v2623_v42 = vadd.f32 %v3043_v37, %v2583_v14 }
0x1248   : > { %v2628_v43 = vadd.f32 %v2623_v42, %v4444_v33 }
0x124a   : > { %2629 = vadd.xlane.f32.xlu0 %v2628_v43 }
0x12d7   : > { %v2630_v44 = vpop.xlane.xlu0 %2629 }
0x12d8   : > { %v2631_v45 = vmul.f32 0.0078125, %v2630_v44 }
0x12da   : > { %v2632_v46 = vsub.f32 %v2628_v43, %v2631_v45 }
0x12dc   : > { %v2633_v47 = vmul.f32 %v2632_v46, %v2632_v46 }
0x12de   : > { %2634 = vadd.xlane.f32.xlu0 %v2633_v47 }
0x136b   : > { %v2635_v48 = vpop.xlane.xlu0 %2634 }
0x136c   : > { %v2636_v49 = vmul.f32 0.0078125, %v2635_v48 }
0x136e   : > { %v2637_v51 = vadd.f32 1e-05, %v2636_v49 }
0x1370   : > { %3456 = vrsqrt.f32 %v2637_v51 }
0x137a   : > { %v3457_v53 = vpop.eup %3456 }
0x137b   : > { %v2639_v33 = vmul.f32 %v3457_v53, %v2632_v46 }
0x137d   : > { %v2647_v56 = vmul.f32 %v2955_v54, %v2639_v33 }
0x137f   : > { %v2655_v0 = vadd.f32 %v2956_v55, %v2647_v56 }
0x1381   : > { %v2656_v57 = vpack.c.bf16 %v2655_v0, %v2655_v0 }
0x1383   : > { %2657 = vst [vmem:[%s661_s10] sm:$0xf] %v2656_v57 }
0x1384   : > { %3699 = shalt.err (!%p3696_p8)
}
0x1385   : > { %s3700_s23 = scalar_lea.hbm %s4471_s3, 64  ;;  %s3704_s26 = scalar_lea.hbm %s4593_s28, 128 }
0x1386   : > { %p3701_p12 = scmp.ne.s32.totalorder %s4471_s3, %s3700_s23  ;;  %p3705_p4 = scmp.lt.u32.totalorder %s4471_s3, %s4593_s28 }
0x1387   : > { %p3706_p1 = scmp.lt.u32.totalorder %s3704_s26, %s3700_s23  ;;  %p3708_p13 = scmp.lt.u32.totalorder %s3700_s23, %s4471_s3 }
0x1388   : > { %p3702_p5 = pnand %p3701_p12, %p4594_p0 }
0x1389   : > { %p3707_p3 = por %p3706_p1, %p3705_p4 }
0x138a   : > { %p3703_p7 = pneg %p3702_p5 }
0x138b   : > { %p3709_p10 = por %p3708_p13, %p3707_p3 }
0x138d   : > { %p3710_p11 = pnand %p3709_p10, %p3703_p7 }
0x138f   : > { %3713 = shalt.err (!%p3710_p11)
}
0x1390   : > { %3191 = dma.vmem_to_hbm [thread:$0]  (%p4594_p0), %s4473_s14, 64, %s4471_s3, %s2659_s20  }
0x1391 PF: > { %s2684_s13 = sand.u32 1, %s3760_s21   ;;  %p4595_p9 = scmp.ne.s32.totalorder %s4573_s18, 0 }
0x1392   : > { %p4596_p6 = scmp.ge.s32.totalorder %s3772_s24, 2  ;;  %s2685_s25 = scalar_lea.sflag [#allocation4], %s2684_s13 }
0x1394   : > { %p3220_p2 = pnand %p4596_p6, %p4595_p9 }
0x1396   : > { %3755 = dma.done.wait (!%p3220_p2), %s2685_s25, 64  }
0x1397   : > { %3757 = vsyncadd (!%p3220_p2), %s2685_s25, 4294967232  ;;  %s4597_s19 = sld [smem:[#allocation24_spill]]  ;;  %s4598_s23 = sld [smem:[#allocation25_spill]] }
0x1398   : > { %p35_p8 = scmp.ge.s32.totalorder %s4062_s29, 4   ;;  %s4599_s21 = smov %s3764_s22 }
0x1399   : > { %s4601_s24 = smov %s4062_s29 }
0x139a   :  { %37 = sbr.rel (!%p35_p8) target bundleno = 23 (0x17), region = 166 }
0x139d   : > { %s4600_s22 = smov %s4597_s19 }
0x13a1   :  { %2690 = vsyncpa [#allocation3], 1 }
0x13a2   :  { %2692 = vsyncpa [#allocation3 + $0x1], 1 }
0x13a3   :  { %2693 = vsyncpa [#allocation6], 1 }
0x13a4   :  { %2695 = vsyncpa [#allocation6 + $0x1], 1 }
0x13a5   :  { %2696 = vsyncpa [#allocation9], 1 }
0x13a6   :  { %2697 = vsyncpa [#allocation12], 1 }
0x13a7   :  { %2698 = vsyncpa [#allocation15], 1 }
0x13a8   :  { %2699 = vsyncpa [#allocation4], 1 }
0x13a9   :  { %2701 = vsyncpa [#allocation4 + $0x1], 1 }

</bundles_post_ra>
